<compile_context>
chip_gen: v6e
topology: v6e:2x2x1
jax: 0.10.0
libtpu: 0.0.40
codegen_flags: <defaults>
</compile_context>

<pallas_src>
import functools

import jax
import jax.numpy as jnp
from jax.experimental import pallas as pl
from jax.experimental.pallas import tpu as pltpu

K_ORDER = 3
GRID_EPS = 0.02
MARGIN = 0.01


# ----------------------------- in-kernel B-spline math -----------------------------

def _bspline_basis(x, eg):
    """Cox-de Boor recursion (k = 3) on an already-extended, sample-shared grid.

    x  : (S, TD)   one evaluation point per sample (d_model tile on lanes)
    eg : (EG, TD)  extended grid, shared by every spline of a d-column
    returns (S, EG - 1 - k, TD), matching B_batch(..., k=3, extend=True) per d column.
    """
    xe = x[:, None, :]                                    # (S, 1, TD)
    egb = eg[None, :, :]                                  # (1, EG, TD)
    b = jnp.where((xe >= egb[:, :-1, :]) & (xe < egb[:, 1:, :]), 1.0, 0.0)
    for k in range(1, K_ORDER + 1):
        # knot-difference reciprocals hoisted out of the per-sample broadcast:
        # O(EG*TD) reciprocals instead of O(S*EG*TD) divides inside the hot loop.
        inv_l = pl.reciprocal(eg[k:-1, :] - eg[:-(k + 1), :], approx=False)
        inv_r = pl.reciprocal(eg[k + 1:, :] - eg[1:-k, :], approx=False)
        t1 = (xe - egb[:, :-(k + 1), :]) * inv_l[None] * b[:, :-1, :]
        t2 = (egb[:, k + 1:, :] - xe) * inv_r[None] * b[:, 1:, :]
        b = t1 + t2
    return b


def _kan_layer_kernel(xs_ref, xf_ref, eg_old_ref, eg_new_ref, coef_ref,
                      sb_ref, sp_ref, mask_ref, trend_ref, out_ref):
    """Fused update_grid_from_samples coef re-fit + KANLayer.forward + residual add."""
    in_dim, td = xs_ref.shape
    out_dim = trend_ref.shape[0]
    size, c, _ = coef_ref.shape

    xs = xs_ref[...]                                      # (in_dim, TD) sorted preacts
    xf = xf_ref[...]                                      # (in_dim, TD) preacts
    eg_old = eg_old_ref[...]                              # (EG, TD)
    eg_new = eg_new_ref[...]                              # (EG, TD)

    # ---- 1) coefficient re-fit (curve2coef: 1xC min-norm least squares per spline) ----
    # sorted tiled samples obey x_sorted[s = u*out_dim + r] == xs[u]
    b_old = _bspline_basis(xs, eg_old)                    # (in_dim, C, TD)
    coef_old = coef_ref[...].reshape(in_dim, out_dim, c, td)      # view: s = u*out_dim+r
    y_eval = jnp.sum(coef_old * b_old[:, None, :, :], axis=2)     # (in_dim, out_dim, TD)

    b_new = _bspline_basis(xs, eg_new)                    # (in_dim, C, TD)
    denom = jnp.sum(b_new * b_new, axis=1)                # (in_dim, TD)
    inv_denom = jnp.where(denom > 0.0,
                          pl.reciprocal(denom, approx=False),
                          0.0)                            # min-norm solution of zero row = 0
    scale = y_eval * inv_denom[:, None, :]                # (in_dim, out_dim, TD)
    coef_new = b_new[:, None, :, :] * scale[:, :, None, :]        # (in_dim, out_dim, C, TD)
    # re-view with the forward ordering s = o*in_dim + j: leading-dim reshapes only,
    # the minor (C, TD) tile is untouched -> no relayout, and coef_new stays in VMEM.
    coef_new = coef_new.reshape(size, c, td).reshape(out_dim, in_dim, c, td)

    # ---- 2) KANLayer.forward: basis / SiLU evaluated once per unique preact ----
    b_fwd = _bspline_basis(xf, eg_new)                    # (in_dim, C, TD)
    spline = jnp.sum(coef_new * b_fwd[None, :, :, :], axis=2)     # (out_dim, in_dim, TD)
    base = xf * pl.reciprocal(1.0 + jnp.exp(-xf), approx=False)   # SiLU, (in_dim, TD)

    y = mask_ref[...] * (sb_ref[...] * base[None, :, :] + sp_ref[...] * spline)
    # group-sum over in_dim (sublane reduce, no MXU) + residual; lane-dense (TD) store.
    out_ref[...] = trend_ref[...] + jnp.sum(y, axis=1)    # (out_dim, TD)


# ----------------------------- pallas_call wrapper -----------------------------

def _lane_spec(leading, td):
    """BlockSpec tiling only the last (d_model / lane) axis."""
    block = tuple(leading) + (td,)
    zeros = (0,) * len(leading)
    return pl.BlockSpec(block, lambda i: zeros + (i,))


def kan_layer_fused(xs, xf, eg_old, eg_new, coef, sb, sp, mask, trend_high, *, td=None):
    """One fused pallas_call per layer, tiled (and megacore-parallel) over d_model."""
    in_dim, d_model = xf.shape
    out_dim = trend_high.shape[0]
    eg_len = eg_old.shape[0]
    size, c, _ = coef.shape
    if td is None:
        # Lane tile over d_model.  Per-block VMEM is dominated by the (size, C, td)
        # coef block (x2 for double buffering); at production sizes shrink td (halve
        # again on v7x's 64 MiB VMEM) and/or additionally tile `size` in multiples of
        # in_dim so pooling groups stay whole.
        td = 128 if d_model % 128 == 0 else d_model
    assert d_model % td == 0
    return pl.pallas_call(
        _kan_layer_kernel,
        grid=(d_model // td,),
        in_specs=[
            _lane_spec((in_dim,), td),             # xs  (sorted unique preacts)
            _lane_spec((in_dim,), td),             # xf  (preacts)
            _lane_spec((eg_len,), td),             # extended old grid (deduped over size)
            _lane_spec((eg_len,), td),             # extended new grid (deduped over size)
            _lane_spec((size, c), td),             # old coef
            _lane_spec((out_dim, in_dim), td),     # scale_base
            _lane_spec((out_dim, in_dim), td),     # scale_sp
            _lane_spec((out_dim, in_dim), td),     # mask
            _lane_spec((out_dim,), td),            # higher-resolution trend (residual)
        ],
        out_specs=_lane_spec((out_dim,), td),
        out_shape=jax.ShapeDtypeStruct((out_dim, d_model), jnp.float32),
        compiler_params=pltpu.CompilerParams(
            dimension_semantics=("parallel",),     # d_model blocks are independent
            vmem_limit_bytes=32 * 1024 * 1024),
    )(xs, xf, eg_old, eg_new, coef, sb, sp, mask, trend_high)


# ----------------------------- plain-JAX glue -----------------------------

def extend_grid(grid, k=K_ORDER):
    """B_batch.extend_grid: uniform extension by h on both ends. (g, d) -> (g + 2k, d)."""
    h = (grid[-1:] - grid[0:1]) / (grid.shape[0] - 1)
    left = grid[0:1] - h * jnp.arange(k, 0, -1, dtype=grid.dtype)[:, None]
    right = grid[-1:] + h * jnp.arange(1, k + 1, dtype=grid.dtype)[:, None]
    return jnp.concatenate([left, grid, right], axis=0)


@functools.partial(jax.jit, static_argnames=("in_dim", "out_dim"))
def _layer_step(x2d, grid_old, coef, sb, sp, mask, trend_high, *, in_dim, out_dim):
    """update_grid_from_samples (sort + grid remix in plain JAX, coef re-fit in-kernel)
    followed by KANLayer.forward + residual add.  d_model is the last axis everywhere."""
    size = in_dim * out_dim
    g = grid_old.shape[0]
    d_model = x2d.shape[-1]

    # sort of the tiled preacts == each sorted unique preact repeated out_dim times
    xs = jnp.sort(x2d, axis=0)                                    # (in_dim, d)
    xs_full = jnp.repeat(xs, out_dim, axis=0)                     # (size, d)

    num_interval = g - 1
    ids = [int(size / num_interval * t) for t in range(num_interval)] + [size - 1]
    grid_adaptive = xs_full[jnp.asarray(ids), :]                  # (g, d)
    ramp = jnp.linspace(0.0, 1.0, g, dtype=jnp.float32)[:, None]
    first, last = grid_adaptive[0:1], grid_adaptive[-1:]
    grid_uniform = first - MARGIN + (last - first + 2.0 * MARGIN) * ramp
    grid_new = GRID_EPS * grid_uniform + (1.0 - GRID_EPS) * grid_adaptive

    sb3 = sb.reshape(out_dim, in_dim, d_model)                    # s = o*in_dim + j
    sp3 = sp.reshape(out_dim, in_dim, d_model)
    mask3 = mask.reshape(out_dim, in_dim, d_model)
    return kan_layer_fused(xs, x2d, extend_grid(grid_old), extend_grid(grid_new),
                           coef, sb3, sp3, mask3, trend_high)


def multi_scale_trend_mixing(trend_list, params):
    """Forward of MultiScaleTrendMixing. trend_list: [(1, seq_i, d_model)], hi-res first."""
    trend_rev = trend_list[::-1]
    out_low = trend_rev[0]
    out_trend_list = [out_low]
    for i in range(len(trend_rev) - 1):
        layer = params[i]
        out2d = _layer_step(out_low[0], layer["grid"], layer["coef"],
                            layer["scale_base"], layer["scale_sp"], layer["mask"],
                            trend_rev[i + 1][0],
                            in_dim=layer["in_dim"], out_dim=layer["out_dim"])
        out_low = out2d[None]                                     # (1, out_dim, d_model)
        out_trend_list.append(out_low)
    out_trend_list.reverse()
    return out_trend_list


def init_params(key, seq_len, down_sampling_window, down_sampling_layers, d_model):
    """Deterministic synthetic init; shapes follow KANLayer.__init__ (num = in_dim*out_dim)
    but stored with d_model on the last (lane) axis, and the grid deduped to (g, d_model)
    (KANLayer's grid is constant across the `size` axis for this module).
    up_sampling_layers1 (MLPLayer) is never used in forward and is omitted."""
    params = []
    for i in reversed(range(down_sampling_layers)):
        in_dim = seq_len // down_sampling_window ** (i + 1)
        out_dim = seq_len // down_sampling_window ** i
        size = in_dim * out_dim
        num = size
        g = num + 1
        c = num + K_ORDER
        grid = jnp.broadcast_to(
            jnp.linspace(-1.0, 1.0, g, dtype=jnp.float32)[:, None], (g, d_model))
        key, sub = jax.random.split(key)
        coef = 0.01 * jax.random.normal(sub, (size, c, d_model), dtype=jnp.float32)
        params.append(dict(
            in_dim=in_dim, out_dim=out_dim, grid=grid, coef=coef,
            scale_base=jnp.ones((size, d_model), jnp.float32),
            scale_sp=jnp.ones((size, d_model), jnp.float32),
            mask=jnp.ones((size, d_model), jnp.float32),
        ))
    return params


if __name__ == "__main__":
    seq_len, window, layers, d_model = 8, 2, 2, 256
    key = jax.random.PRNGKey(0)
    k_trend, k_param = jax.random.split(key)

    seqs = [seq_len // window ** i for i in range(layers + 1)]        # [8, 4, 2]
    tkeys = jax.random.split(k_trend, len(seqs))
    trend_list = [jax.random.normal(tkeys[i], (1, s, d_model), jnp.float32)
                  for i, s in enumerate(seqs)]

    params = init_params(k_param, seq_len, window, layers, d_model)

    outs = multi_scale_trend_mixing(trend_list, params)
    for o in outs:
        jax.block_until_ready(o)

    assert [tuple(o.shape) for o in outs] == [tuple(t.shape) for t in trend_list]
    assert all(bool(jnp.all(jnp.isfinite(o))) for o in outs)
    print("KERNEL_OK")
</pallas_src>

<mosaic_0001>
module attributes {stable_mosaic.version = 11 : i64} {
  func.func @_kan_layer_kernel(%arg0: i32, %arg1: memref<2x128xf32, #tpu.memory_space<vmem>>, %arg2: memref<2x128xf32, #tpu.memory_space<vmem>>, %arg3: memref<15x128xf32, #tpu.memory_space<vmem>>, %arg4: memref<15x128xf32, #tpu.memory_space<vmem>>, %arg5: memref<8x11x128xf32, #tpu.memory_space<vmem>>, %arg6: memref<4x2x128xf32, #tpu.memory_space<vmem>>, %arg7: memref<4x2x128xf32, #tpu.memory_space<vmem>>, %arg8: memref<4x2x128xf32, #tpu.memory_space<vmem>>, %arg9: memref<4x128xf32, #tpu.memory_space<vmem>>, %arg10: memref<4x128xf32, #tpu.memory_space<vmem>>) attributes {dimension_semantics = [#tpu.dimension_semantics<parallel>], iteration_bounds = array<i64: 2>, scalar_prefetch = 0 : i64, scratch_operands = 0 : i64, tpu.core_type = #tpu.core_type<tc>, window_params = [{transform_indices = @transform_0, window_bounds = array<i64: 2, 128>}, {transform_indices = @transform_1, window_bounds = array<i64: 2, 128>}, {transform_indices = @transform_2, window_bounds = array<i64: 15, 128>}, {transform_indices = @transform_3, window_bounds = array<i64: 15, 128>}, {transform_indices = @transform_4, window_bounds = array<i64: 8, 11, 128>}, {transform_indices = @transform_5, window_bounds = array<i64: 4, 2, 128>}, {transform_indices = @transform_6, window_bounds = array<i64: 4, 2, 128>}, {transform_indices = @transform_7, window_bounds = array<i64: 4, 2, 128>}, {transform_indices = @transform_8, window_bounds = array<i64: 4, 128>}, {transform_indices = @transform_9, window_bounds = array<i64: 4, 128>}]} {
    %c0 = arith.constant 0 : index
    %c0_0 = arith.constant 0 : index
    %0 = vector.load %arg1[%c0, %c0_0] : memref<2x128xf32, #tpu.memory_space<vmem>>, vector<2x128xf32>
    %c0_1 = arith.constant 0 : index
    %c0_2 = arith.constant 0 : index
    %1 = vector.load %arg2[%c0_1, %c0_2] : memref<2x128xf32, #tpu.memory_space<vmem>>, vector<2x128xf32>
    %c0_3 = arith.constant 0 : index
    %c0_4 = arith.constant 0 : index
    %2 = vector.load %arg3[%c0_3, %c0_4] : memref<15x128xf32, #tpu.memory_space<vmem>>, vector<15x128xf32>
    %c0_5 = arith.constant 0 : index
    %c0_6 = arith.constant 0 : index
    %3 = vector.load %arg4[%c0_5, %c0_6] : memref<15x128xf32, #tpu.memory_space<vmem>>, vector<15x128xf32>
    %4 = vector.shape_cast %0 : vector<2x128xf32> to vector<2x1x128xf32>
    %5 = vector.shape_cast %2 : vector<15x128xf32> to vector<1x15x128xf32>
    %6 = vector.extract_strided_slice %5 {offsets = [0, 0, 0], sizes = [1, 14, 128], strides = [1, 1, 1]} : vector<1x15x128xf32> to vector<1x14x128xf32>
    %7 = vector.broadcast %4 : vector<2x1x128xf32> to vector<2x14x128xf32>
    %8 = vector.broadcast %6 : vector<1x14x128xf32> to vector<2x14x128xf32>
    %9 = arith.cmpf oge, %7, %8 : vector<2x14x128xf32>
    %10 = vector.extract_strided_slice %5 {offsets = [0, 1, 0], sizes = [1, 14, 128], strides = [1, 1, 1]} : vector<1x15x128xf32> to vector<1x14x128xf32>
    %11 = vector.broadcast %4 : vector<2x1x128xf32> to vector<2x14x128xf32>
    %12 = vector.broadcast %10 : vector<1x14x128xf32> to vector<2x14x128xf32>
    %13 = arith.cmpf olt, %11, %12 : vector<2x14x128xf32>
    %14 = arith.andi %9, %13 : vector<2x14x128xi1>
    %cst = arith.constant 1.000000e+00 : f32
    %cst_7 = arith.constant 0.000000e+00 : f32
    %15 = vector.broadcast %cst : f32 to vector<2x14x128xf32>
    %16 = vector.broadcast %cst_7 : f32 to vector<2x14x128xf32>
    %17 = arith.select %14, %15, %16 : vector<2x14x128xi1>, vector<2x14x128xf32>
    %18 = vector.extract_strided_slice %2 {offsets = [1, 0], sizes = [13, 128], strides = [1, 1]} : vector<15x128xf32> to vector<13x128xf32>
    %19 = vector.extract_strided_slice %2 {offsets = [0, 0], sizes = [13, 128], strides = [1, 1]} : vector<15x128xf32> to vector<13x128xf32>
    %20 = arith.subf %18, %19 : vector<13x128xf32>
    %21 = tpu.reciprocal %20 : vector<13x128xf32> -> vector<13x128xf32>
    %22 = vector.extract_strided_slice %2 {offsets = [2, 0], sizes = [13, 128], strides = [1, 1]} : vector<15x128xf32> to vector<13x128xf32>
    %23 = vector.extract_strided_slice %2 {offsets = [1, 0], sizes = [13, 128], strides = [1, 1]} : vector<15x128xf32> to vector<13x128xf32>
    %24 = arith.subf %22, %23 : vector<13x128xf32>
    %25 = tpu.reciprocal %24 : vector<13x128xf32> -> vector<13x128xf32>
    %26 = vector.extract_strided_slice %5 {offsets = [0, 0, 0], sizes = [1, 13, 128], strides = [1, 1, 1]} : vector<1x15x128xf32> to vector<1x13x128xf32>
    %27 = vector.broadcast %4 : vector<2x1x128xf32> to vector<2x13x128xf32>
    %28 = vector.broadcast %26 : vector<1x13x128xf32> to vector<2x13x128xf32>
    %29 = arith.subf %27, %28 : vector<2x13x128xf32>
    %30 = vector.shape_cast %21 : vector<13x128xf32> to vector<1x13x128xf32>
    %31 = vector.broadcast %30 : vector<1x13x128xf32> to vector<2x13x128xf32>
    %32 = arith.mulf %29, %31 : vector<2x13x128xf32>
    %33 = vector.extract_strided_slice %17 {offsets = [0, 0, 0], sizes = [2, 13, 128], strides = [1, 1, 1]} : vector<2x14x128xf32> to vector<2x13x128xf32>
    %34 = arith.mulf %32, %33 : vector<2x13x128xf32>
    %35 = vector.extract_strided_slice %5 {offsets = [0, 2, 0], sizes = [1, 13, 128], strides = [1, 1, 1]} : vector<1x15x128xf32> to vector<1x13x128xf32>
    %36 = vector.broadcast %35 : vector<1x13x128xf32> to vector<2x13x128xf32>
    %37 = vector.broadcast %4 : vector<2x1x128xf32> to vector<2x13x128xf32>
    %38 = arith.subf %36, %37 : vector<2x13x128xf32>
    %39 = vector.shape_cast %25 : vector<13x128xf32> to vector<1x13x128xf32>
    %40 = vector.broadcast %39 : vector<1x13x128xf32> to vector<2x13x128xf32>
    %41 = arith.mulf %38, %40 : vector<2x13x128xf32>
    %42 = vector.extract_strided_slice %17 {offsets = [0, 1, 0], sizes = [2, 13, 128], strides = [1, 1, 1]} : vector<2x14x128xf32> to vector<2x13x128xf32>
    %43 = arith.mulf %41, %42 : vector<2x13x128xf32>
    %44 = arith.addf %34, %43 : vector<2x13x128xf32>
    %45 = vector.extract_strided_slice %2 {offsets = [2, 0], sizes = [12, 128], strides = [1, 1]} : vector<15x128xf32> to vector<12x128xf32>
    %46 = vector.extract_strided_slice %2 {offsets = [0, 0], sizes = [12, 128], strides = [1, 1]} : vector<15x128xf32> to vector<12x128xf32>
    %47 = arith.subf %45, %46 : vector<12x128xf32>
    %48 = tpu.reciprocal %47 : vector<12x128xf32> -> vector<12x128xf32>
    %49 = vector.extract_strided_slice %2 {offsets = [3, 0], sizes = [12, 128], strides = [1, 1]} : vector<15x128xf32> to vector<12x128xf32>
    %50 = vector.extract_strided_slice %2 {offsets = [1, 0], sizes = [12, 128], strides = [1, 1]} : vector<15x128xf32> to vector<12x128xf32>
    %51 = arith.subf %49, %50 : vector<12x128xf32>
    %52 = tpu.reciprocal %51 : vector<12x128xf32> -> vector<12x128xf32>
    %53 = vector.extract_strided_slice %5 {offsets = [0, 0, 0], sizes = [1, 12, 128], strides = [1, 1, 1]} : vector<1x15x128xf32> to vector<1x12x128xf32>
    %54 = vector.broadcast %4 : vector<2x1x128xf32> to vector<2x12x128xf32>
    %55 = vector.broadcast %53 : vector<1x12x128xf32> to vector<2x12x128xf32>
    %56 = arith.subf %54, %55 : vector<2x12x128xf32>
    %57 = vector.shape_cast %48 : vector<12x128xf32> to vector<1x12x128xf32>
    %58 = vector.broadcast %57 : vector<1x12x128xf32> to vector<2x12x128xf32>
    %59 = arith.mulf %56, %58 : vector<2x12x128xf32>
    %60 = vector.extract_strided_slice %44 {offsets = [0, 0, 0], sizes = [2, 12, 128], strides = [1, 1, 1]} : vector<2x13x128xf32> to vector<2x12x128xf32>
    %61 = arith.mulf %59, %60 : vector<2x12x128xf32>
    %62 = vector.extract_strided_slice %5 {offsets = [0, 3, 0], sizes = [1, 12, 128], strides = [1, 1, 1]} : vector<1x15x128xf32> to vector<1x12x128xf32>
    %63 = vector.broadcast %62 : vector<1x12x128xf32> to vector<2x12x128xf32>
    %64 = vector.broadcast %4 : vector<2x1x128xf32> to vector<2x12x128xf32>
    %65 = arith.subf %63, %64 : vector<2x12x128xf32>
    %66 = vector.shape_cast %52 : vector<12x128xf32> to vector<1x12x128xf32>
    %67 = vector.broadcast %66 : vector<1x12x128xf32> to vector<2x12x128xf32>
    %68 = arith.mulf %65, %67 : vector<2x12x128xf32>
    %69 = vector.extract_strided_slice %44 {offsets = [0, 1, 0], sizes = [2, 12, 128], strides = [1, 1, 1]} : vector<2x13x128xf32> to vector<2x12x128xf32>
    %70 = arith.mulf %68, %69 : vector<2x12x128xf32>
    %71 = arith.addf %61, %70 : vector<2x12x128xf32>
    %72 = vector.extract_strided_slice %2 {offsets = [3, 0], sizes = [11, 128], strides = [1, 1]} : vector<15x128xf32> to vector<11x128xf32>
    %73 = vector.extract_strided_slice %2 {offsets = [0, 0], sizes = [11, 128], strides = [1, 1]} : vector<15x128xf32> to vector<11x128xf32>
    %74 = arith.subf %72, %73 : vector<11x128xf32>
    %75 = tpu.reciprocal %74 : vector<11x128xf32> -> vector<11x128xf32>
    %76 = vector.extract_strided_slice %2 {offsets = [4, 0], sizes = [11, 128], strides = [1, 1]} : vector<15x128xf32> to vector<11x128xf32>
    %77 = vector.extract_strided_slice %2 {offsets = [1, 0], sizes = [11, 128], strides = [1, 1]} : vector<15x128xf32> to vector<11x128xf32>
    %78 = arith.subf %76, %77 : vector<11x128xf32>
    %79 = tpu.reciprocal %78 : vector<11x128xf32> -> vector<11x128xf32>
    %80 = vector.extract_strided_slice %5 {offsets = [0, 0, 0], sizes = [1, 11, 128], strides = [1, 1, 1]} : vector<1x15x128xf32> to vector<1x11x128xf32>
    %81 = vector.broadcast %4 : vector<2x1x128xf32> to vector<2x11x128xf32>
    %82 = vector.broadcast %80 : vector<1x11x128xf32> to vector<2x11x128xf32>
    %83 = arith.subf %81, %82 : vector<2x11x128xf32>
    %84 = vector.shape_cast %75 : vector<11x128xf32> to vector<1x11x128xf32>
    %85 = vector.broadcast %84 : vector<1x11x128xf32> to vector<2x11x128xf32>
    %86 = arith.mulf %83, %85 : vector<2x11x128xf32>
    %87 = vector.extract_strided_slice %71 {offsets = [0, 0, 0], sizes = [2, 11, 128], strides = [1, 1, 1]} : vector<2x12x128xf32> to vector<2x11x128xf32>
    %88 = arith.mulf %86, %87 : vector<2x11x128xf32>
    %89 = vector.extract_strided_slice %5 {offsets = [0, 4, 0], sizes = [1, 11, 128], strides = [1, 1, 1]} : vector<1x15x128xf32> to vector<1x11x128xf32>
    %90 = vector.broadcast %89 : vector<1x11x128xf32> to vector<2x11x128xf32>
    %91 = vector.broadcast %4 : vector<2x1x128xf32> to vector<2x11x128xf32>
    %92 = arith.subf %90, %91 : vector<2x11x128xf32>
    %93 = vector.shape_cast %79 : vector<11x128xf32> to vector<1x11x128xf32>
    %94 = vector.broadcast %93 : vector<1x11x128xf32> to vector<2x11x128xf32>
    %95 = arith.mulf %92, %94 : vector<2x11x128xf32>
    %96 = vector.extract_strided_slice %71 {offsets = [0, 1, 0], sizes = [2, 11, 128], strides = [1, 1, 1]} : vector<2x12x128xf32> to vector<2x11x128xf32>
    %97 = arith.mulf %95, %96 : vector<2x11x128xf32>
    %98 = arith.addf %88, %97 : vector<2x11x128xf32>
    %c0_8 = arith.constant 0 : index
    %c0_9 = arith.constant 0 : index
    %c0_10 = arith.constant 0 : index
    %99 = vector.load %arg5[%c0_8, %c0_9, %c0_10] : memref<8x11x128xf32, #tpu.memory_space<vmem>>, vector<8x11x128xf32>
    %100 = vector.shape_cast %99 : vector<8x11x128xf32> to vector<2x4x11x128xf32>
    %101 = vector.shape_cast %98 : vector<2x11x128xf32> to vector<2x1x11x128xf32>
    %102 = vector.broadcast %101 : vector<2x1x11x128xf32> to vector<2x4x11x128xf32>
    %103 = arith.mulf %100, %102 : vector<2x4x11x128xf32>
    %cst_11 = arith.constant dense<0.000000e+00> : vector<2x4x128xf32>
    %104 = vector.multi_reduction <add>, %103, %cst_11 [2] : vector<2x4x11x128xf32> to vector<2x4x128xf32>
    %105 = vector.shape_cast %0 : vector<2x128xf32> to vector<2x1x128xf32>
    %106 = vector.shape_cast %3 : vector<15x128xf32> to vector<1x15x128xf32>
    %107 = vector.extract_strided_slice %106 {offsets = [0, 0, 0], sizes = [1, 14, 128], strides = [1, 1, 1]} : vector<1x15x128xf32> to vector<1x14x128xf32>
    %108 = vector.broadcast %105 : vector<2x1x128xf32> to vector<2x14x128xf32>
    %109 = vector.broadcast %107 : vector<1x14x128xf32> to vector<2x14x128xf32>
    %110 = arith.cmpf oge, %108, %109 : vector<2x14x128xf32>
    %111 = vector.extract_strided_slice %106 {offsets = [0, 1, 0], sizes = [1, 14, 128], strides = [1, 1, 1]} : vector<1x15x128xf32> to vector<1x14x128xf32>
    %112 = vector.broadcast %105 : vector<2x1x128xf32> to vector<2x14x128xf32>
    %113 = vector.broadcast %111 : vector<1x14x128xf32> to vector<2x14x128xf32>
    %114 = arith.cmpf olt, %112, %113 : vector<2x14x128xf32>
    %115 = arith.andi %110, %114 : vector<2x14x128xi1>
    %cst_12 = arith.constant 1.000000e+00 : f32
    %cst_13 = arith.constant 0.000000e+00 : f32
    %116 = vector.broadcast %cst_12 : f32 to vector<2x14x128xf32>
    %117 = vector.broadcast %cst_13 : f32 to vector<2x14x128xf32>
    %118 = arith.select %115, %116, %117 : vector<2x14x128xi1>, vector<2x14x128xf32>
    %119 = vector.extract_strided_slice %3 {offsets = [1, 0], sizes = [13, 128], strides = [1, 1]} : vector<15x128xf32> to vector<13x128xf32>
    %120 = vector.extract_strided_slice %3 {offsets = [0, 0], sizes = [13, 128], strides = [1, 1]} : vector<15x128xf32> to vector<13x128xf32>
    %121 = arith.subf %119, %120 : vector<13x128xf32>
    %122 = tpu.reciprocal %121 : vector<13x128xf32> -> vector<13x128xf32>
    %123 = vector.extract_strided_slice %3 {offsets = [2, 0], sizes = [13, 128], strides = [1, 1]} : vector<15x128xf32> to vector<13x128xf32>
    %124 = vector.extract_strided_slice %3 {offsets = [1, 0], sizes = [13, 128], strides = [1, 1]} : vector<15x128xf32> to vector<13x128xf32>
    %125 = arith.subf %123, %124 : vector<13x128xf32>
    %126 = tpu.reciprocal %125 : vector<13x128xf32> -> vector<13x128xf32>
    %127 = vector.extract_strided_slice %106 {offsets = [0, 0, 0], sizes = [1, 13, 128], strides = [1, 1, 1]} : vector<1x15x128xf32> to vector<1x13x128xf32>
    %128 = vector.broadcast %105 : vector<2x1x128xf32> to vector<2x13x128xf32>
    %129 = vector.broadcast %127 : vector<1x13x128xf32> to vector<2x13x128xf32>
    %130 = arith.subf %128, %129 : vector<2x13x128xf32>
    %131 = vector.shape_cast %122 : vector<13x128xf32> to vector<1x13x128xf32>
    %132 = vector.broadcast %131 : vector<1x13x128xf32> to vector<2x13x128xf32>
    %133 = arith.mulf %130, %132 : vector<2x13x128xf32>
    %134 = vector.extract_strided_slice %118 {offsets = [0, 0, 0], sizes = [2, 13, 128], strides = [1, 1, 1]} : vector<2x14x128xf32> to vector<2x13x128xf32>
    %135 = arith.mulf %133, %134 : vector<2x13x128xf32>
    %136 = vector.extract_strided_slice %106 {offsets = [0, 2, 0], sizes = [1, 13, 128], strides = [1, 1, 1]} : vector<1x15x128xf32> to vector<1x13x128xf32>
    %137 = vector.broadcast %136 : vector<1x13x128xf32> to vector<2x13x128xf32>
    %138 = vector.broadcast %105 : vector<2x1x128xf32> to vector<2x13x128xf32>
    %139 = arith.subf %137, %138 : vector<2x13x128xf32>
    %140 = vector.shape_cast %126 : vector<13x128xf32> to vector<1x13x128xf32>
    %141 = vector.broadcast %140 : vector<1x13x128xf32> to vector<2x13x128xf32>
    %142 = arith.mulf %139, %141 : vector<2x13x128xf32>
    %143 = vector.extract_strided_slice %118 {offsets = [0, 1, 0], sizes = [2, 13, 128], strides = [1, 1, 1]} : vector<2x14x128xf32> to vector<2x13x128xf32>
    %144 = arith.mulf %142, %143 : vector<2x13x128xf32>
    %145 = arith.addf %135, %144 : vector<2x13x128xf32>
    %146 = vector.extract_strided_slice %3 {offsets = [2, 0], sizes = [12, 128], strides = [1, 1]} : vector<15x128xf32> to vector<12x128xf32>
    %147 = vector.extract_strided_slice %3 {offsets = [0, 0], sizes = [12, 128], strides = [1, 1]} : vector<15x128xf32> to vector<12x128xf32>
    %148 = arith.subf %146, %147 : vector<12x128xf32>
    %149 = tpu.reciprocal %148 : vector<12x128xf32> -> vector<12x128xf32>
    %150 = vector.extract_strided_slice %3 {offsets = [3, 0], sizes = [12, 128], strides = [1, 1]} : vector<15x128xf32> to vector<12x128xf32>
    %151 = vector.extract_strided_slice %3 {offsets = [1, 0], sizes = [12, 128], strides = [1, 1]} : vector<15x128xf32> to vector<12x128xf32>
    %152 = arith.subf %150, %151 : vector<12x128xf32>
    %153 = tpu.reciprocal %152 : vector<12x128xf32> -> vector<12x128xf32>
    %154 = vector.extract_strided_slice %106 {offsets = [0, 0, 0], sizes = [1, 12, 128], strides = [1, 1, 1]} : vector<1x15x128xf32> to vector<1x12x128xf32>
    %155 = vector.broadcast %105 : vector<2x1x128xf32> to vector<2x12x128xf32>
    %156 = vector.broadcast %154 : vector<1x12x128xf32> to vector<2x12x128xf32>
    %157 = arith.subf %155, %156 : vector<2x12x128xf32>
    %158 = vector.shape_cast %149 : vector<12x128xf32> to vector<1x12x128xf32>
    %159 = vector.broadcast %158 : vector<1x12x128xf32> to vector<2x12x128xf32>
    %160 = arith.mulf %157, %159 : vector<2x12x128xf32>
    %161 = vector.extract_strided_slice %145 {offsets = [0, 0, 0], sizes = [2, 12, 128], strides = [1, 1, 1]} : vector<2x13x128xf32> to vector<2x12x128xf32>
    %162 = arith.mulf %160, %161 : vector<2x12x128xf32>
    %163 = vector.extract_strided_slice %106 {offsets = [0, 3, 0], sizes = [1, 12, 128], strides = [1, 1, 1]} : vector<1x15x128xf32> to vector<1x12x128xf32>
    %164 = vector.broadcast %163 : vector<1x12x128xf32> to vector<2x12x128xf32>
    %165 = vector.broadcast %105 : vector<2x1x128xf32> to vector<2x12x128xf32>
    %166 = arith.subf %164, %165 : vector<2x12x128xf32>
    %167 = vector.shape_cast %153 : vector<12x128xf32> to vector<1x12x128xf32>
    %168 = vector.broadcast %167 : vector<1x12x128xf32> to vector<2x12x128xf32>
    %169 = arith.mulf %166, %168 : vector<2x12x128xf32>
    %170 = vector.extract_strided_slice %145 {offsets = [0, 1, 0], sizes = [2, 12, 128], strides = [1, 1, 1]} : vector<2x13x128xf32> to vector<2x12x128xf32>
    %171 = arith.mulf %169, %170 : vector<2x12x128xf32>
    %172 = arith.addf %162, %171 : vector<2x12x128xf32>
    %173 = vector.extract_strided_slice %3 {offsets = [3, 0], sizes = [11, 128], strides = [1, 1]} : vector<15x128xf32> to vector<11x128xf32>
    %174 = vector.extract_strided_slice %3 {offsets = [0, 0], sizes = [11, 128], strides = [1, 1]} : vector<15x128xf32> to vector<11x128xf32>
    %175 = arith.subf %173, %174 : vector<11x128xf32>
    %176 = tpu.reciprocal %175 : vector<11x128xf32> -> vector<11x128xf32>
    %177 = vector.extract_strided_slice %3 {offsets = [4, 0], sizes = [11, 128], strides = [1, 1]} : vector<15x128xf32> to vector<11x128xf32>
    %178 = vector.extract_strided_slice %3 {offsets = [1, 0], sizes = [11, 128], strides = [1, 1]} : vector<15x128xf32> to vector<11x128xf32>
    %179 = arith.subf %177, %178 : vector<11x128xf32>
    %180 = tpu.reciprocal %179 : vector<11x128xf32> -> vector<11x128xf32>
    %181 = vector.extract_strided_slice %106 {offsets = [0, 0, 0], sizes = [1, 11, 128], strides = [1, 1, 1]} : vector<1x15x128xf32> to vector<1x11x128xf32>
    %182 = vector.broadcast %105 : vector<2x1x128xf32> to vector<2x11x128xf32>
    %183 = vector.broadcast %181 : vector<1x11x128xf32> to vector<2x11x128xf32>
    %184 = arith.subf %182, %183 : vector<2x11x128xf32>
    %185 = vector.shape_cast %176 : vector<11x128xf32> to vector<1x11x128xf32>
    %186 = vector.broadcast %185 : vector<1x11x128xf32> to vector<2x11x128xf32>
    %187 = arith.mulf %184, %186 : vector<2x11x128xf32>
    %188 = vector.extract_strided_slice %172 {offsets = [0, 0, 0], sizes = [2, 11, 128], strides = [1, 1, 1]} : vector<2x12x128xf32> to vector<2x11x128xf32>
    %189 = arith.mulf %187, %188 : vector<2x11x128xf32>
    %190 = vector.extract_strided_slice %106 {offsets = [0, 4, 0], sizes = [1, 11, 128], strides = [1, 1, 1]} : vector<1x15x128xf32> to vector<1x11x128xf32>
    %191 = vector.broadcast %190 : vector<1x11x128xf32> to vector<2x11x128xf32>
    %192 = vector.broadcast %105 : vector<2x1x128xf32> to vector<2x11x128xf32>
    %193 = arith.subf %191, %192 : vector<2x11x128xf32>
    %194 = vector.shape_cast %180 : vector<11x128xf32> to vector<1x11x128xf32>
    %195 = vector.broadcast %194 : vector<1x11x128xf32> to vector<2x11x128xf32>
    %196 = arith.mulf %193, %195 : vector<2x11x128xf32>
    %197 = vector.extract_strided_slice %172 {offsets = [0, 1, 0], sizes = [2, 11, 128], strides = [1, 1, 1]} : vector<2x12x128xf32> to vector<2x11x128xf32>
    %198 = arith.mulf %196, %197 : vector<2x11x128xf32>
    %199 = arith.addf %189, %198 : vector<2x11x128xf32>
    %200 = arith.mulf %199, %199 : vector<2x11x128xf32>
    %cst_14 = arith.constant dense<0.000000e+00> : vector<2x128xf32>
    %201 = vector.multi_reduction <add>, %200, %cst_14 [1] : vector<2x11x128xf32> to vector<2x128xf32>
    %cst_15 = arith.constant 0.000000e+00 : f32
    %202 = vector.broadcast %cst_15 : f32 to vector<2x128xf32>
    %203 = arith.cmpf ogt, %201, %202 : vector<2x128xf32>
    %204 = tpu.reciprocal %201 : vector<2x128xf32> -> vector<2x128xf32>
    %cst_16 = arith.constant 0.000000e+00 : f32
    %205 = vector.broadcast %cst_16 : f32 to vector<2x128xf32>
    %206 = arith.select %203, %204, %205 : vector<2x128xi1>, vector<2x128xf32>
    %207 = vector.shape_cast %206 : vector<2x128xf32> to vector<2x1x128xf32>
    %208 = vector.broadcast %207 : vector<2x1x128xf32> to vector<2x4x128xf32>
    %209 = arith.mulf %104, %208 : vector<2x4x128xf32>
    %210 = vector.shape_cast %199 : vector<2x11x128xf32> to vector<2x1x11x128xf32>
    %211 = vector.shape_cast %209 : vector<2x4x128xf32> to vector<2x4x1x128xf32>
    %212 = vector.broadcast %210 : vector<2x1x11x128xf32> to vector<2x4x11x128xf32>
    %213 = vector.broadcast %211 : vector<2x4x1x128xf32> to vector<2x4x11x128xf32>
    %214 = arith.mulf %212, %213 : vector<2x4x11x128xf32>
    %215 = vector.shape_cast %214 : vector<2x4x11x128xf32> to vector<8x11x128xf32>
    %216 = vector.shape_cast %215 : vector<8x11x128xf32> to vector<4x2x11x128xf32>
    %217 = vector.shape_cast %1 : vector<2x128xf32> to vector<2x1x128xf32>
    %218 = vector.shape_cast %3 : vector<15x128xf32> to vector<1x15x128xf32>
    %219 = vector.extract_strided_slice %218 {offsets = [0, 0, 0], sizes = [1, 14, 128], strides = [1, 1, 1]} : vector<1x15x128xf32> to vector<1x14x128xf32>
    %220 = vector.broadcast %217 : vector<2x1x128xf32> to vector<2x14x128xf32>
    %221 = vector.broadcast %219 : vector<1x14x128xf32> to vector<2x14x128xf32>
    %222 = arith.cmpf oge, %220, %221 : vector<2x14x128xf32>
    %223 = vector.extract_strided_slice %218 {offsets = [0, 1, 0], sizes = [1, 14, 128], strides = [1, 1, 1]} : vector<1x15x128xf32> to vector<1x14x128xf32>
    %224 = vector.broadcast %217 : vector<2x1x128xf32> to vector<2x14x128xf32>
    %225 = vector.broadcast %223 : vector<1x14x128xf32> to vector<2x14x128xf32>
    %226 = arith.cmpf olt, %224, %225 : vector<2x14x128xf32>
    %227 = arith.andi %222, %226 : vector<2x14x128xi1>
    %cst_17 = arith.constant 1.000000e+00 : f32
    %cst_18 = arith.constant 0.000000e+00 : f32
    %228 = vector.broadcast %cst_17 : f32 to vector<2x14x128xf32>
    %229 = vector.broadcast %cst_18 : f32 to vector<2x14x128xf32>
    %230 = arith.select %227, %228, %229 : vector<2x14x128xi1>, vector<2x14x128xf32>
    %231 = vector.extract_strided_slice %3 {offsets = [1, 0], sizes = [13, 128], strides = [1, 1]} : vector<15x128xf32> to vector<13x128xf32>
    %232 = vector.extract_strided_slice %3 {offsets = [0, 0], sizes = [13, 128], strides = [1, 1]} : vector<15x128xf32> to vector<13x128xf32>
    %233 = arith.subf %231, %232 : vector<13x128xf32>
    %234 = tpu.reciprocal %233 : vector<13x128xf32> -> vector<13x128xf32>
    %235 = vector.extract_strided_slice %3 {offsets = [2, 0], sizes = [13, 128], strides = [1, 1]} : vector<15x128xf32> to vector<13x128xf32>
    %236 = vector.extract_strided_slice %3 {offsets = [1, 0], sizes = [13, 128], strides = [1, 1]} : vector<15x128xf32> to vector<13x128xf32>
    %237 = arith.subf %235, %236 : vector<13x128xf32>
    %238 = tpu.reciprocal %237 : vector<13x128xf32> -> vector<13x128xf32>
    %239 = vector.extract_strided_slice %218 {offsets = [0, 0, 0], sizes = [1, 13, 128], strides = [1, 1, 1]} : vector<1x15x128xf32> to vector<1x13x128xf32>
    %240 = vector.broadcast %217 : vector<2x1x128xf32> to vector<2x13x128xf32>
    %241 = vector.broadcast %239 : vector<1x13x128xf32> to vector<2x13x128xf32>
    %242 = arith.subf %240, %241 : vector<2x13x128xf32>
    %243 = vector.shape_cast %234 : vector<13x128xf32> to vector<1x13x128xf32>
    %244 = vector.broadcast %243 : vector<1x13x128xf32> to vector<2x13x128xf32>
    %245 = arith.mulf %242, %244 : vector<2x13x128xf32>
    %246 = vector.extract_strided_slice %230 {offsets = [0, 0, 0], sizes = [2, 13, 128], strides = [1, 1, 1]} : vector<2x14x128xf32> to vector<2x13x128xf32>
    %247 = arith.mulf %245, %246 : vector<2x13x128xf32>
    %248 = vector.extract_strided_slice %218 {offsets = [0, 2, 0], sizes = [1, 13, 128], strides = [1, 1, 1]} : vector<1x15x128xf32> to vector<1x13x128xf32>
    %249 = vector.broadcast %248 : vector<1x13x128xf32> to vector<2x13x128xf32>
    %250 = vector.broadcast %217 : vector<2x1x128xf32> to vector<2x13x128xf32>
    %251 = arith.subf %249, %250 : vector<2x13x128xf32>
    %252 = vector.shape_cast %238 : vector<13x128xf32> to vector<1x13x128xf32>
    %253 = vector.broadcast %252 : vector<1x13x128xf32> to vector<2x13x128xf32>
    %254 = arith.mulf %251, %253 : vector<2x13x128xf32>
    %255 = vector.extract_strided_slice %230 {offsets = [0, 1, 0], sizes = [2, 13, 128], strides = [1, 1, 1]} : vector<2x14x128xf32> to vector<2x13x128xf32>
    %256 = arith.mulf %254, %255 : vector<2x13x128xf32>
    %257 = arith.addf %247, %256 : vector<2x13x128xf32>
    %258 = vector.extract_strided_slice %3 {offsets = [2, 0], sizes = [12, 128], strides = [1, 1]} : vector<15x128xf32> to vector<12x128xf32>
    %259 = vector.extract_strided_slice %3 {offsets = [0, 0], sizes = [12, 128], strides = [1, 1]} : vector<15x128xf32> to vector<12x128xf32>
    %260 = arith.subf %258, %259 : vector<12x128xf32>
    %261 = tpu.reciprocal %260 : vector<12x128xf32> -> vector<12x128xf32>
    %262 = vector.extract_strided_slice %3 {offsets = [3, 0], sizes = [12, 128], strides = [1, 1]} : vector<15x128xf32> to vector<12x128xf32>
    %263 = vector.extract_strided_slice %3 {offsets = [1, 0], sizes = [12, 128], strides = [1, 1]} : vector<15x128xf32> to vector<12x128xf32>
    %264 = arith.subf %262, %263 : vector<12x128xf32>
    %265 = tpu.reciprocal %264 : vector<12x128xf32> -> vector<12x128xf32>
    %266 = vector.extract_strided_slice %218 {offsets = [0, 0, 0], sizes = [1, 12, 128], strides = [1, 1, 1]} : vector<1x15x128xf32> to vector<1x12x128xf32>
    %267 = vector.broadcast %217 : vector<2x1x128xf32> to vector<2x12x128xf32>
    %268 = vector.broadcast %266 : vector<1x12x128xf32> to vector<2x12x128xf32>
    %269 = arith.subf %267, %268 : vector<2x12x128xf32>
    %270 = vector.shape_cast %261 : vector<12x128xf32> to vector<1x12x128xf32>
    %271 = vector.broadcast %270 : vector<1x12x128xf32> to vector<2x12x128xf32>
    %272 = arith.mulf %269, %271 : vector<2x12x128xf32>
    %273 = vector.extract_strided_slice %257 {offsets = [0, 0, 0], sizes = [2, 12, 128], strides = [1, 1, 1]} : vector<2x13x128xf32> to vector<2x12x128xf32>
    %274 = arith.mulf %272, %273 : vector<2x12x128xf32>
    %275 = vector.extract_strided_slice %218 {offsets = [0, 3, 0], sizes = [1, 12, 128], strides = [1, 1, 1]} : vector<1x15x128xf32> to vector<1x12x128xf32>
    %276 = vector.broadcast %275 : vector<1x12x128xf32> to vector<2x12x128xf32>
    %277 = vector.broadcast %217 : vector<2x1x128xf32> to vector<2x12x128xf32>
    %278 = arith.subf %276, %277 : vector<2x12x128xf32>
    %279 = vector.shape_cast %265 : vector<12x128xf32> to vector<1x12x128xf32>
    %280 = vector.broadcast %279 : vector<1x12x128xf32> to vector<2x12x128xf32>
    %281 = arith.mulf %278, %280 : vector<2x12x128xf32>
    %282 = vector.extract_strided_slice %257 {offsets = [0, 1, 0], sizes = [2, 12, 128], strides = [1, 1, 1]} : vector<2x13x128xf32> to vector<2x12x128xf32>
    %283 = arith.mulf %281, %282 : vector<2x12x128xf32>
    %284 = arith.addf %274, %283 : vector<2x12x128xf32>
    %285 = vector.extract_strided_slice %3 {offsets = [3, 0], sizes = [11, 128], strides = [1, 1]} : vector<15x128xf32> to vector<11x128xf32>
    %286 = vector.extract_strided_slice %3 {offsets = [0, 0], sizes = [11, 128], strides = [1, 1]} : vector<15x128xf32> to vector<11x128xf32>
    %287 = arith.subf %285, %286 : vector<11x128xf32>
    %288 = tpu.reciprocal %287 : vector<11x128xf32> -> vector<11x128xf32>
    %289 = vector.extract_strided_slice %3 {offsets = [4, 0], sizes = [11, 128], strides = [1, 1]} : vector<15x128xf32> to vector<11x128xf32>
    %290 = vector.extract_strided_slice %3 {offsets = [1, 0], sizes = [11, 128], strides = [1, 1]} : vector<15x128xf32> to vector<11x128xf32>
    %291 = arith.subf %289, %290 : vector<11x128xf32>
    %292 = tpu.reciprocal %291 : vector<11x128xf32> -> vector<11x128xf32>
    %293 = vector.extract_strided_slice %218 {offsets = [0, 0, 0], sizes = [1, 11, 128], strides = [1, 1, 1]} : vector<1x15x128xf32> to vector<1x11x128xf32>
    %294 = vector.broadcast %217 : vector<2x1x128xf32> to vector<2x11x128xf32>
    %295 = vector.broadcast %293 : vector<1x11x128xf32> to vector<2x11x128xf32>
    %296 = arith.subf %294, %295 : vector<2x11x128xf32>
    %297 = vector.shape_cast %288 : vector<11x128xf32> to vector<1x11x128xf32>
    %298 = vector.broadcast %297 : vector<1x11x128xf32> to vector<2x11x128xf32>
    %299 = arith.mulf %296, %298 : vector<2x11x128xf32>
    %300 = vector.extract_strided_slice %284 {offsets = [0, 0, 0], sizes = [2, 11, 128], strides = [1, 1, 1]} : vector<2x12x128xf32> to vector<2x11x128xf32>
    %301 = arith.mulf %299, %300 : vector<2x11x128xf32>
    %302 = vector.extract_strided_slice %218 {offsets = [0, 4, 0], sizes = [1, 11, 128], strides = [1, 1, 1]} : vector<1x15x128xf32> to vector<1x11x128xf32>
    %303 = vector.broadcast %302 : vector<1x11x128xf32> to vector<2x11x128xf32>
    %304 = vector.broadcast %217 : vector<2x1x128xf32> to vector<2x11x128xf32>
    %305 = arith.subf %303, %304 : vector<2x11x128xf32>
    %306 = vector.shape_cast %292 : vector<11x128xf32> to vector<1x11x128xf32>
    %307 = vector.broadcast %306 : vector<1x11x128xf32> to vector<2x11x128xf32>
    %308 = arith.mulf %305, %307 : vector<2x11x128xf32>
    %309 = vector.extract_strided_slice %284 {offsets = [0, 1, 0], sizes = [2, 11, 128], strides = [1, 1, 1]} : vector<2x12x128xf32> to vector<2x11x128xf32>
    %310 = arith.mulf %308, %309 : vector<2x11x128xf32>
    %311 = arith.addf %301, %310 : vector<2x11x128xf32>
    %312 = vector.shape_cast %311 : vector<2x11x128xf32> to vector<1x2x11x128xf32>
    %313 = vector.broadcast %312 : vector<1x2x11x128xf32> to vector<4x2x11x128xf32>
    %314 = arith.mulf %216, %313 : vector<4x2x11x128xf32>
    %cst_19 = arith.constant dense<0.000000e+00> : vector<4x2x128xf32>
    %315 = vector.multi_reduction <add>, %314, %cst_19 [2] : vector<4x2x11x128xf32> to vector<4x2x128xf32>
    %cst_20 = arith.constant 0.000000e+00 : f32
    %316 = vector.broadcast %cst_20 : f32 to vector<2x128xf32>
    %317 = arith.subf %316, %1 : vector<2x128xf32>
    %318 = math.exp %317 : vector<2x128xf32>
    %cst_21 = arith.constant 1.000000e+00 : f32
    %319 = vector.broadcast %cst_21 : f32 to vector<2x128xf32>
    %320 = arith.addf %319, %318 : vector<2x128xf32>
    %321 = tpu.reciprocal %320 : vector<2x128xf32> -> vector<2x128xf32>
    %322 = arith.mulf %1, %321 : vector<2x128xf32>
    %c0_22 = arith.constant 0 : index
    %c0_23 = arith.constant 0 : index
    %c0_24 = arith.constant 0 : index
    %323 = vector.load %arg8[%c0_22, %c0_23, %c0_24] : memref<4x2x128xf32, #tpu.memory_space<vmem>>, vector<4x2x128xf32>
    %c0_25 = arith.constant 0 : index
    %c0_26 = arith.constant 0 : index
    %c0_27 = arith.constant 0 : index
    %324 = vector.load %arg6[%c0_25, %c0_26, %c0_27] : memref<4x2x128xf32, #tpu.memory_space<vmem>>, vector<4x2x128xf32>
    %325 = vector.shape_cast %322 : vector<2x128xf32> to vector<1x2x128xf32>
    %326 = vector.broadcast %325 : vector<1x2x128xf32> to vector<4x2x128xf32>
    %327 = arith.mulf %324, %326 : vector<4x2x128xf32>
    %c0_28 = arith.constant 0 : index
    %c0_29 = arith.constant 0 : index
    %c0_30 = arith.constant 0 : index
    %328 = vector.load %arg7[%c0_28, %c0_29, %c0_30] : memref<4x2x128xf32, #tpu.memory_space<vmem>>, vector<4x2x128xf32>
    %329 = arith.mulf %328, %315 : vector<4x2x128xf32>
    %330 = arith.addf %327, %329 : vector<4x2x128xf32>
    %331 = arith.mulf %323, %330 : vector<4x2x128xf32>
    %c0_31 = arith.constant 0 : index
    %c0_32 = arith.constant 0 : index
    %332 = vector.load %arg9[%c0_31, %c0_32] : memref<4x128xf32, #tpu.memory_space<vmem>>, vector<4x128xf32>
    %cst_33 = arith.constant dense<0.000000e+00> : vector<4x128xf32>
    %333 = vector.multi_reduction <add>, %331, %cst_33 [1] : vector<4x2x128xf32> to vector<4x128xf32>
    %334 = arith.addf %332, %333 : vector<4x128xf32>
    %c0_34 = arith.constant 0 : index
    %c0_35 = arith.constant 0 : index
    %335 = vector.load %arg10[%c0_34, %c0_35] : memref<4x128xf32, #tpu.memory_space<vmem>>, vector<4x128xf32>
    tpu.vector_store %arg10[%c0_34, %c0_35], %334 {strides = array<i32>} : memref<4x128xf32, #tpu.memory_space<vmem>>, vector<4x128xf32>,
    return
  }
  func.func @transform_0(%arg0: i32) -> (i32, i32) {
    %c0_i32 = arith.constant 0 : i32
    %c0_i32_0 = arith.constant 0 : i32
    return %c0_i32, %arg0 : i32, i32
  }
  func.func @transform_1(%arg0: i32) -> (i32, i32) {
    %c0_i32 = arith.constant 0 : i32
    %c0_i32_0 = arith.constant 0 : i32
    return %c0_i32, %arg0 : i32, i32
  }
  func.func @transform_2(%arg0: i32) -> (i32, i32) {
    %c0_i32 = arith.constant 0 : i32
    %c0_i32_0 = arith.constant 0 : i32
    return %c0_i32, %arg0 : i32, i32
  }
  func.func @transform_3(%arg0: i32) -> (i32, i32) {
    %c0_i32 = arith.constant 0 : i32
    %c0_i32_0 = arith.constant 0 : i32
    return %c0_i32, %arg0 : i32, i32
  }
  func.func @transform_4(%arg0: i32) -> (i32, i32, i32) {
    %c0_i32 = arith.constant 0 : i32
    %c0_i32_0 = arith.constant 0 : i32
    %c0_i32_1 = arith.constant 0 : i32
    return %c0_i32, %c0_i32_0, %arg0 : i32, i32, i32
  }
  func.func @transform_5(%arg0: i32) -> (i32, i32, i32) {
    %c0_i32 = arith.constant 0 : i32
    %c0_i32_0 = arith.constant 0 : i32
    %c0_i32_1 = arith.constant 0 : i32
    return %c0_i32, %c0_i32_0, %arg0 : i32, i32, i32
  }
  func.func @transform_6(%arg0: i32) -> (i32, i32, i32) {
    %c0_i32 = arith.constant 0 : i32
    %c0_i32_0 = arith.constant 0 : i32
    %c0_i32_1 = arith.constant 0 : i32
    return %c0_i32, %c0_i32_0, %arg0 : i32, i32, i32
  }
  func.func @transform_7(%arg0: i32) -> (i32, i32, i32) {
    %c0_i32 = arith.constant 0 : i32
    %c0_i32_0 = arith.constant 0 : i32
    %c0_i32_1 = arith.constant 0 : i32
    return %c0_i32, %c0_i32_0, %arg0 : i32, i32, i32
  }
  func.func @transform_8(%arg0: i32) -> (i32, i32) {
    %c0_i32 = arith.constant 0 : i32
    %c0_i32_0 = arith.constant 0 : i32
    return %c0_i32, %arg0 : i32, i32
  }
  func.func @transform_9(%arg0: i32) -> (i32, i32) {
    %c0_i32 = arith.constant 0 : i32
    %c0_i32_0 = arith.constant 0 : i32
    return %c0_i32, %arg0 : i32, i32
  }
}

</mosaic_0001>

<bundles_post_ra>
// kernel: _layer_step.1
= control target key start
LH: loop header
LB: loop body
LE: loop exit
PB: predicated region body
PF: predicated region fallthrough
CT: control target
= control target key end

     0   :  { %14 = vsyncpa [#allocation9], 0  ;;  %s3254_s0 = inlined_call_operand.vmem [shape: f32[2,256], index: 0, kind: input, shape index: {}]   ;;  %s3255_s1 = inlined_call_operand.vmem [shape: f32[2,256], index: 1, kind: input, shape index: {}]   ;;  %s3256_s2 = inlined_call_operand.vmem [shape: f32[15,256], index: 2, kind: input, shape index: {}]   ;;  %s3257_s3 = inlined_call_operand.vmem [shape: f32[15,256], index: 3, kind: input, shape index: {}]   ;;  %s3258_s4 = inlined_call_operand.vmem [shape: f32[8,11,256], index: 4, kind: input, shape index: {}]   ;;  %s3259_s5 = inlined_call_operand.vmem [shape: f32[4,2,256], index: 5, kind: input, shape index: {}]   ;;  %s3260_s6 = inlined_call_operand.vmem [shape: f32[4,2,256], index: 6, kind: input, shape index: {}]   ;;  %s3261_s7 = inlined_call_operand.vmem [shape: f32[4,2,256], index: 7, kind: input, shape index: {}]   ;;  %s3262_s8 = inlined_call_operand.vmem [shape: f32[4,256], index: 8, kind: input, shape index: {}]   ;;  %s3263_s9 = inlined_call_operand.hbm [shape: f32[4,256], index: 9, kind: output, shape index: {}]  }
   0x1   :  { %16 = vsyncpa [#allocation9 + $0x1], 0  ;;  %s2321_s30 = smov 0   ;;  %s2323_s10 = smov 0  }
   0x2   :  { %s2325_s11 = smov 0   ;;  %s2327_s12 = smov 0  }
   0x3 LB: > { %s2342_s13 = sadd.s32 4294967295, %s2265_s12   ;;  %s2100_s14 = sadd.s32 4294967294, %s2265_s12   ;;  %s2265_s12 = sphi %s2327_s12, %s3303_s12   ;;  %s2261_s11 = sphi %s2325_s11, %s3302_s11   ;;  %s2257_s10 = sphi %s2323_s10, %s3301_s10   ;;  %s2253_s30 = sphi %s2321_s30, %s3300_s30  }
   0x4   : > { %s2346_s15 = sadd.s32 1, %s2265_s12   ;;  %s81_s16 = sadd.s32 1, %s2261_s11 }
   0x5   : > { %s78_s17 = ssub.s32 %s2265_s12, %s2346_s15  ;;  %p88_p0 = scmp.ne.s32.totalorder %s2261_s11, %s2257_s10 }
   0x6   : > { %p79_p1 = scmp.eq.s32.totalorder %s78_s17, 0  ;;  %p89_p2 = scmp.eq.s32.totalorder %s2265_s12, 0 }
   0x7   : > { %p274_p3 = scmp.eq.s32.totalorder %s2342_s13, 1  ;;  %p279_p4 = scmp.ne.s32.totalorder %s2257_s10, %s2253_s30 }
   0x8   : > { %s2358_s18 = scalar_select %p79_p1, %s2261_s11, %s81_s16  }
   0x9   : > { %p2360_p5 = por %p89_p2, %p88_p0  ;;  %p2364_p6 = por %p274_p3, %p88_p0 }
   0xa   : > { %3269 = sst [smem:[#allocation11_spill]] %s2358_s18  ;;  %p280_p7 = scmp.eq.s32.totalorder %s2100_s14, 1 }
   0xb   : > { %p3268_p9 = scmp.ge.s32.totalorder %s2265_s12, 2 }
   0xc   : > { %p2368_p8 = por %p280_p7, %p279_p4 }
   0xd   : > { %296 = sbr.rel (%p3268_p9) target bundleno = 58 (0x3a), region = 16 }
  0x12   : > { %313 = sbr.rel (!%p2360_p5) target bundleno = 23 (0x17), region = 28  ;;  %s315_s22 = sand.u32 (%p2360_p5), 1, %s2261_s11  }
  0x13   : > { %s2104_s23 = sshll.u32 (%p2360_p5), %s2265_s12, 3  ;;  %s2103_s24 = sshll.u32 (%p2360_p5), %s315_s22, 4 }
  0x14   : > { %s319_s27 = scalar_lea.vmem (%p2360_p5), %s3256_s2, %s2104_s23  ;;  %s317_s28 = scalar_lea.vmem (%p2360_p5), [#allocation2], %s2103_s24 }
  0x15   : > { %v350_v0 = vld [vmem:[%s319_s27] sm:$0xff] (%p2360_p5)  ;;  %v352_v1 = vld [vmem:[%s319_s27 + $0x10] sm:$0xff] (%p2360_p5) }
  0x16   : > { %351 = vst [vmem:[%s317_s28] sm:$0xff] (%p2360_p5), %v350_v0  ;;  %353 = vst [vmem:[%s317_s28 + $0x8] sm:$0xff] (%p2360_p5), %v352_v1 }
  0x17 PF: > { %359 = sbr.rel (!%p2360_p5) target bundleno = 28 (0x1c), region = 66  ;;  %s361_s29 = sand.u32 (%p2360_p5), 1, %s2261_s11  }
  0x18   : > { %s2106_s14 = sshll.u32 (%p2360_p5), %s2265_s12, 3  ;;  %s2105_s16 = sshll.u32 (%p2360_p5), %s361_s29, 4 }
  0x19   : > { %s365_s18 = scalar_lea.vmem (%p2360_p5), %s3257_s3, %s2106_s14  ;;  %s363_s23 = scalar_lea.vmem (%p2360_p5), [#allocation3], %s2105_s16 }
  0x1a   : > { %v396_v2 = vld [vmem:[%s365_s18] sm:$0xff] (%p2360_p5)  ;;  %v398_v3 = vld [vmem:[%s365_s18 + $0x10] sm:$0xff] (%p2360_p5) }
  0x1b   : > { %397 = vst [vmem:[%s363_s23] sm:$0xff] (%p2360_p5), %v396_v2  ;;  %399 = vst [vmem:[%s363_s23 + $0x8] sm:$0xff] (%p2360_p5), %v398_v3 }
  0x1c PF: > { %405 = sbr.rel (!%p2360_p5) target bundleno = 40 (0x28), region = 104  ;;  %s407_s24 = sand.u32 (%p2360_p5), 1, %s2261_s11  }
  0x1d   : > { %s2108_s25 = sshll.u32 (%p2360_p5), %s2265_s12, 3  ;;  %s2107_s26 = sshll.u32 (%p2360_p5), %s407_s24, 7 }
  0x1e   : > { %s2396_s29 = scalar_lea.vmem (%p2360_p5), %s3258_s4, %s2108_s25  ;;  %s409_s18 = scalar_lea.vmem (%p2360_p5), [#allocation4], %s2107_s26 }
  0x1f   : > { %v470_v4 = vld [vmem:[%s2396_s29] sm:$0xff] (%p2360_p5)  ;;  %v472_v5 = vld [vmem:[%s2396_s29 + $0x10] sm:$0xff] (%p2360_p5) }
  0x20   : > { %v474_v6 = vld [vmem:[%s2396_s29 + $0x20] sm:$0xff] (%p2360_p5)  ;;  %471 = vst [vmem:[%s409_s18] sm:$0xff] (%p2360_p5), %v470_v4  ;;  %473 = vst [vmem:[%s409_s18 + $0x8] sm:$0xff] (%p2360_p5), %v472_v5  ;;  %v476_v7 = vld [vmem:[%s2396_s29 + $0x30] sm:$0xff] (%p2360_p5) }
  0x21   : > { %475 = vst [vmem:[%s409_s18 + $0x10] sm:$0xff] %v474_v6  ;;  %v478_v8 = vld [vmem:[%s2396_s29 + $0x40] sm:$0xff]  ;;  %v480_v9 = vld [vmem:[%s2396_s29 + $0x50] sm:$0xff]  ;;  %477 = vst [vmem:[%s409_s18 + $0x18] sm:$0xff] %v476_v7 }
  0x22   : > { %479 = vst [vmem:[%s409_s18 + $0x20] sm:$0xff] %v478_v8  ;;  %481 = vst [vmem:[%s409_s18 + $0x28] sm:$0xff] %v480_v9  ;;  %v482_v10 = vld [vmem:[%s2396_s29 + $0x60] sm:$0xff]  ;;  %v484_v11 = vld [vmem:[%s2396_s29 + $0x70] sm:$0xff] }
  0x23   : > { %v486_v12 = vld [vmem:[%s2396_s29 + $0x80] sm:$0xff]  ;;  %483 = vst [vmem:[%s409_s18 + $0x30] sm:$0xff] %v482_v10  ;;  %485 = vst [vmem:[%s409_s18 + $0x38] sm:$0xff] %v484_v11  ;;  %v488_v13 = vld [vmem:[%s2396_s29 + $0x90] sm:$0xff] }
  0x24   : > { %487 = vst [vmem:[%s409_s18 + $0x40] sm:$0xff] %v486_v12  ;;  %v490_v14 = vld [vmem:[%s2396_s29 + $0xa0] sm:$0xff]  ;;  %v492_v15 = vld [vmem:[%s2396_s29 + $0xb0] sm:$0xff]  ;;  %489 = vst [vmem:[%s409_s18 + $0x48] sm:$0xff] %v488_v13 }
  0x25   : > { %491 = vst [vmem:[%s409_s18 + $0x50] sm:$0xff] %v490_v14  ;;  %493 = vst [vmem:[%s409_s18 + $0x58] sm:$0xff] %v492_v15  ;;  %v494_v16 = vld [vmem:[%s2396_s29 + $0xc0] sm:$0xff]  ;;  %v496_v17 = vld [vmem:[%s2396_s29 + $0xd0] sm:$0xff] }
  0x26   : > { %v498_v18 = vld [vmem:[%s2396_s29 + $0xe0] sm:$0xff]  ;;  %495 = vst [vmem:[%s409_s18 + $0x60] sm:$0xff] %v494_v16  ;;  %497 = vst [vmem:[%s409_s18 + $0x68] sm:$0xff] %v496_v17  ;;  %v500_v19 = vld [vmem:[%s2396_s29 + $0xf0] sm:$0xff] }
  0x27   : > { %499 = vst [vmem:[%s409_s18 + $0x70] sm:$0xff] %v498_v18  ;;  %501 = vst [vmem:[%s409_s18 + $0x78] sm:$0xff] %v500_v19 }
  0x28 PF: > { %507 = sbr.rel (!%p2360_p5) target bundleno = 46 (0x2e), region = 142  ;;  %s509_s14 = sand.u32 (%p2360_p5), 1, %s2261_s11  }
  0x29   : > { %s2110_s16 = sshll.u32 (%p2360_p5), %s2265_s12, 1  ;;  %s2109_s17 = sshll.u32 (%p2360_p5), %s509_s14, 3 }
  0x2a   : > { %s513_s24 = scalar_lea.vmem (%p2360_p5), %s3259_s5, %s2110_s16  ;;  %s511_s25 = scalar_lea.vmem (%p2360_p5), [#allocation5], %s2109_s17 }
  0x2b   : > { %v530_v20 = vld [vmem:[%s513_s24] sm:$0x3] (%p2360_p5)  ;;  %v532_v21 = vld [vmem:[%s513_s24 + $0x4] sm:$0x3] (%p2360_p5)  ;;  %v534_v22 = vld [vmem:[%s513_s24 + $0x8] sm:$0x3] (%p2360_p5) }
  0x2c   : > { %531 = vst [vmem:[%s511_s25] sm:$0x3] (%p2360_p5), %v530_v20  ;;  %533 = vst [vmem:[%s511_s25 + $0x2] sm:$0x3] (%p2360_p5), %v532_v21  ;;  %v536_v23 = vld [vmem:[%s513_s24 + $0xc] sm:$0x3] (%p2360_p5) }
  0x2d   : > { %535 = vst [vmem:[%s511_s25 + $0x4] sm:$0x3] %v534_v22  ;;  %537 = vst [vmem:[%s511_s25 + $0x6] sm:$0x3] %v536_v23 }
  0x2e PF: > { %569 = sbr.rel (!%p2360_p5) target bundleno = 52 (0x34), region = 183  ;;  %s571_s26 = sand.u32 (%p2360_p5), 1, %s2261_s11  }
  0x2f   : > { %s2112_s27 = sshll.u32 (%p2360_p5), %s2265_s12, 1  ;;  %s2111_s28 = sshll.u32 (%p2360_p5), %s571_s26, 3 }
  0x30   : > { %s575_s14 = scalar_lea.vmem (%p2360_p5), %s3260_s6, %s2112_s27  ;;  %s573_s16 = scalar_lea.vmem (%p2360_p5), [#allocation6], %s2111_s28 }
  0x31   : > { %v592_v24 = vld [vmem:[%s575_s14] sm:$0x3] (%p2360_p5)  ;;  %v594_v25 = vld [vmem:[%s575_s14 + $0x4] sm:$0x3] (%p2360_p5)  ;;  %v596_v26 = vld [vmem:[%s575_s14 + $0x8] sm:$0x3] (%p2360_p5) }
  0x32   : > { %593 = vst [vmem:[%s573_s16] sm:$0x3] (%p2360_p5), %v592_v24  ;;  %595 = vst [vmem:[%s573_s16 + $0x2] sm:$0x3] (%p2360_p5), %v594_v25  ;;  %v598_v27 = vld [vmem:[%s575_s14 + $0xc] sm:$0x3] (%p2360_p5) }
  0x33   : > { %597 = vst [vmem:[%s573_s16 + $0x4] sm:$0x3] %v596_v26  ;;  %599 = vst [vmem:[%s573_s16 + $0x6] sm:$0x3] %v598_v27 }
  0x34 PF: > { %631 = sbr.rel (!%p2360_p5) target bundleno = 58 (0x3a), region = 224  ;;  %s633_s17 = sand.u32 (%p2360_p5), 1, %s2261_s11  }
  0x35   : > { %s2114_s22 = sshll.u32 (%p2360_p5), %s2265_s12, 1  ;;  %s2113_s23 = sshll.u32 (%p2360_p5), %s633_s17, 3 }
  0x36   : > { %s637_s26 = scalar_lea.vmem (%p2360_p5), %s3261_s7, %s2114_s22  ;;  %s635_s27 = scalar_lea.vmem (%p2360_p5), [#allocation7], %s2113_s23 }
  0x37   : > { %v654_v28 = vld [vmem:[%s637_s26] sm:$0x3] (%p2360_p5)  ;;  %v656_v29 = vld [vmem:[%s637_s26 + $0x4] sm:$0x3] (%p2360_p5)  ;;  %v658_v30 = vld [vmem:[%s637_s26 + $0x8] sm:$0x3] (%p2360_p5) }
  0x38   : > { %655 = vst [vmem:[%s635_s27] sm:$0x3] (%p2360_p5), %v654_v28  ;;  %657 = vst [vmem:[%s635_s27 + $0x2] sm:$0x3] (%p2360_p5), %v656_v29  ;;  %v660_v31 = vld [vmem:[%s637_s26 + $0xc] sm:$0x3] (%p2360_p5) }
  0x39   : > { %659 = vst [vmem:[%s635_s27 + $0x4] sm:$0x3] %v658_v30  ;;  %661 = vst [vmem:[%s635_s27 + $0x6] sm:$0x3] %v660_v31 }
  0x3a PF: > { %p2115_p10 = scmp.ge.s32.totalorder %s2265_s12, 1  ;;  %p699_p11 = scmp.lt.s32.totalorder %s2265_s12, 3 }
  0x3c   : > { %p700_p12 = pnand %p2115_p10, %p699_p11 }
  0x3d   : > { %s2438_s19 = sand.u32 (!%p700_p12), 1, %s2257_s10   ;;  %p808_p13 = scmp.lt.s32.totalorder (!%p700_p12), %s2342_s13, 1 }
  0x3e   : > { %703 = sbr.rel (%p700_p12) target bundleno = 285 (0x11d), region = 269  ;;  %s2116_s28 = sshll.u32 (!%p700_p12), %s2438_s19, 4 }
  0x3f   : > { %s708_s29 = scalar_lea.vmem (!%p700_p12), [#allocation2], %s2116_s28  ;;  %s715_s23 = scalar_lea.vmem (!%p700_p12), [#allocation3], %s2116_s28 }
  0x40   : > { %s2118_s24 = sshll.u32 (!%p700_p12), %s2438_s19, 7 }
  0x41   : > { %s2621_s25 = scalar_lea.vmem (!%p700_p12), [#allocation4], %s2118_s24  ;;  %s2270_s24 = smov (!%p700_p12), [#allocation8]  }
  0x43   : > { %v838_v32 = vlaneseq  ;;  %v2267_v33 = vmov 1966171168   ;;  %v2444_v35 = vld [vmem:[%s708_s29] sm:$0xff]  ;;  %v2446_v36 = vld [vmem:[%s708_s29 + $0x8] sm:$0x7f]  ;;  %vm892_vm0 = vcmask 1040384  }
  0x44   : > { %v836_v34 = vunpack.c.l.s4 %v2267_v33  ;;  %v893_v39 = vrot.slane %v2444_v35, 7  ;;  %v894_v40 = vrot.slane %v2446_v36, 7  ;;  %v967_v41 = vrot.slane %v2444_v35, 6  ;;  %s2458_s18 = scalar_select %p808_p13, %s2342_s13, 1 }
  0x45   : > { %v839_v38 = vshrl.u32 %v838_v32, 7  ;;  %v968_v42 = vrot.slane %v2446_v36, 6  ;;  %vm966_vm1 = vcmask 1041408   ;;  %v1033_v44 = vrot.slane %v2444_v35, 5  ;;  %s3149_s29 = sshll.u32 %s2438_s19, 3 }
  0x46   : > { %v837_v37 = vunpack.c.0.s8 %v836_v34  ;;  %v898_v43 = vsub.f32 %v2444_v35, %v893_v39  ;;  %v1034_v45 = vrot.slane %v2446_v36, 5  ;;  %v895_v46 = vsel %vm892_vm0, %v893_v39, %v894_v40  ;;  %s2123_s14 = sshll.u32 %s2458_s18, 1  ;;  %s736_s16 = scalar_lea.vmem [#allocation6], %s3149_s29 }
  0x47   : > { %v969_v47 = vsel %vm966_vm1, %v967_v41, %v968_v42  ;;  %v899_v49 = vsub.f32 %v2446_v36, %v895_v46  ;;  %vm1032_vm2 = vcmask 1042432   ;;  %v972_v50 = vsub.f32 %v2444_v35, %v967_v41  ;;  %s811_s22 = scalar_lea.vmem %s3254_s0, %s2123_s14  ;;  %s815_s28 = scalar_lea.vmem %s3255_s1, %s2123_s14 }
  0x48   : > { %v2462_v48 = vsub.s32 %v837_v37, %v839_v38  ;;  %2173 = vrcp.f32 %v898_v43  ;;  %v1035_v51 = vsel %vm1032_vm2, %v1033_v44, %v1034_v45  ;;  %v2473_v52 = vsub.s32 0, %v839_v38  ;;  %v2126_v54 = vld.sshfl [vmem:[%s811_s22] sm:$0x11 pattern:$0x75316420]  ;;  %s3172_s14 = scalar_lea.vmem [#allocation5], %s3149_s29 }
  0x49   : > { %2175 = vrcp.f32 %v899_v49  ;;  %v973_v53 = vsub.f32 %v2446_v36, %v969_v47  ;;  %v1038_v55 = vsub.f32 %v2444_v35, %v1033_v44  ;;  %v834_v56 = vcombine.high %v2126_v54, %v2126_v54  ;;  %s743_s17 = scalar_lea.vmem [#allocation7], %s3149_s29  ;;  %s2122_s22 = sshll.u32 %s2438_s19, 2 }
  0x4a   : > { %v841_v57 = vrot.slane %v2126_v54, %v2462_v48  ;;  %v1039_v58 = vsub.f32 %v2446_v36, %v1035_v51  ;;  %2177 = vrcp.f32 %v972_v50  ;;  %vm871_vm3 = vcmask 1046528   ;;  %s807_s27 = scalar_lea.vmem [#allocation8], %s2122_s22 }
  0x4b   : > { %v848_v59 = vrot.slane %v834_v56, %v2462_v48  ;;  %2179 = vrcp.f32 %v973_v53  ;;  %v2268_v62 = vmov 0   ;;  %v3266_v20 = vmov 0.0  }
  0x4c   : > { %v2481_v60 = vrot.slane %v841_v57, %v2473_v52  ;;  %2181 = vrcp.f32 %v1038_v55 }
  0x4d   : > { %v2484_v61 = vrot.slane %v848_v59, %v2473_v52  ;;  %2183 = vrcp.f32 %v1039_v58 }
  0x4e   : > { %vm859_vm4 = vcmp.ge.f32.partialorder %v2481_v60, %v2444_v35  ;;  %vm863_vm5 = vcmp.lt.f32.partialorder %v2481_v60, %v2444_v35  ;;  %vm860_vm6 = vcmp.ge.f32.partialorder %v2481_v60, %v2446_v36  ;;  %vm864_vm7 = vcmp.lt.f32.partialorder %v2481_v60, %v2446_v36 }
  0x4f   : > { %v867_v63 = vsel %vm863_vm5, 1, %v2268_v62  ;;  %v2497_v0 = vsub.f32 %v2481_v60, %v2444_v35  ;;  %vm861_vm8 = vcmp.ge.f32.partialorder %v2484_v61, %v2444_v35  ;;  %vm865_vm9 = vcmp.lt.f32.partialorder %v2484_v61, %v2444_v35 }
  0x50   : > { %vm866_vm10 = vcmp.lt.f32.partialorder %v2484_v61, %v2446_v36  ;;  %v2507_v1 = vsub.f32 %v2481_v60, %v2446_v36  ;;  %v868_v2 = vsel %vm864_vm7, 1, %v2268_v62  ;;  %v869_v3 = vsel %vm865_vm9, 1, %v2268_v62 }
  0x51   : > { %v870_v4 = vsel %vm866_vm10, 1, %v2268_v62  ;;  %v872_v5 = vrot.slane %v867_v63, 1  ;;  %vm862_vm11 = vcmp.ge.f32.partialorder %v2484_v61, %v2446_v36  ;;  %v873_v6 = vrot.slane %v868_v2, 1 }
  0x52   : > { %v875_v7 = vrot.slane %v869_v3, 1  ;;  %v876_v8 = vrot.slane %v870_v4, 1  ;;  %v2516_v10 = vsub.f32 %v2484_v61, %v2446_v36  ;;  %v2520_v11 = vsub.f32 %v2444_v35, %v2481_v60 }
  0x53   : > { %v2524_v12 = vsub.f32 %v2446_v36, %v2481_v60  ;;  %v2528_v13 = vsub.f32 %v2444_v35, %v2484_v61  ;;  %v874_v14 = vsel %vm871_vm3, %v872_v5, %v873_v6  ;;  %vm879_vm12 = vcmp.ne.s32.totalorder %v873_v6, 0 }
  0x54   : > { %v877_v15 = vsel %vm871_vm3, %v875_v7, %v876_v8  ;;  %vm2532_vm13 = vcmp.ne.s32.totalorder %v876_v8, 0  ;;  %vm878_vm14 = vcmp.ne.s32.totalorder %v874_v14, 0  ;;  %vm883_vm5 = vmand %vm860_vm6, %vm879_vm12  ;;  %v2541_v19 = vsub.f32 %v2446_v36, %v2484_v61  ;;  %v2583_v8 = vld [vmem:[%s715_s23] sm:$0xff] }
  0x55   : > { %v2174_v9 = vpop.eup %2173  ;;  %vm880_vm15 = vcmp.ne.s32.totalorder %v877_v15, 0  ;;  %vm882_vm7 = vmand %vm859_vm4, %vm878_vm14  ;;  %v887_v21 = vsel %vm883_vm5, 1.0, %v3266_v20  ;;  %v2549_v22 = vsub.f32 %v2484_v61, %v2444_v35  ;;  %vm3265_vm9 = vcmask 1044480  }
  0x56   : > { %v2176_v17 = vpop.eup %2175  ;;  %v908_v18 = vrot.slane %v2174_v9, 1  ;;  %v925_v24 = vmul.f32 %v2174_v9, %v2520_v11  ;;  %vm884_vm6 = vmand %vm861_vm8, %vm880_vm15  ;;  %v886_v25 = vsel %vm882_vm7, 1.0, %v3266_v20  ;;  %v927_v27 = vmul.f32 %v2174_v9, %v2528_v13  ;;  %v2585_v9 = vld [vmem:[%s715_s23 + $0x8] sm:$0x7f]  ;;  %s2125_s23 = sshll.u32 %s2458_s18, 2  ;;  %s2128_s18 = sshll.u32 %s2342_s13, 6 }
  0x57   : > { %v909_v23 = vrot.slane %v2176_v17, 1  ;;  %v926_v26 = vmul.f32 %v2176_v17, %v2524_v12  ;;  %v934_v28 = vrot.slane %v887_v21, 7  ;;  %v2178_v29 = vpop.eup %2177  ;;  %vm885_vm4 = vmand %vm862_vm11, %vm2532_vm13  ;;  %v888_v30 = vsel %vm884_vm6, 1.0, %v3266_v20  ;;  %s819_s26 = scalar_lea.vmem %s3262_s8, %s2125_s23 }
  0x58   : > { %v2180_v34 = vpop.eup %2179  ;;  %v889_v35 = vsel %vm885_vm4, 1.0, %v3266_v20  ;;  %v928_v38 = vmul.f32 %v2176_v17, %v2541_v19  ;;  %v933_v39 = vrot.slane %v886_v25, 7  ;;  %v936_v41 = vrot.slane %v888_v30, 7 }
  0x59   : > { %v910_v31 = vsel %vm871_vm3, %v908_v18, %v909_v23  ;;  %v914_v32 = vmul.f32 %v909_v23, %v2507_v1  ;;  %v916_v33 = vmul.f32 %v909_v23, %v2516_v10  ;;  %v2570_v40 = vpop.eup %2181  ;;  %v937_v42 = vrot.slane %v889_v35, 7 }
  0x5a   : > { %v913_v37 = vmul.f32 %v910_v31, %v2497_v0  ;;  %v915_v36 = vmul.f32 %v910_v31, %v2549_v22  ;;  %v2573_v43 = vpop.eup %2183  ;;  %v935_v46 = vsel %vm892_vm0, %v933_v39, %v934_v28  ;;  %v943_v47 = vmul.f32 %v933_v39, %v925_v24 }
  0x5b   : > { %v918_v44 = vmul.f32 %v914_v32, %v887_v21  ;;  %v920_v45 = vmul.f32 %v916_v33, %v889_v35  ;;  %v938_v49 = vsel %vm892_vm0, %v936_v41, %v937_v42  ;;  %v944_v50 = vmul.f32 %v935_v46, %v926_v26 }
  0x5c   : > { %v945_v51 = vmul.f32 %v936_v41, %v927_v27  ;;  %v978_v53 = vrot.slane %v2178_v29, 2  ;;  %v917_v54 = vmul.f32 %v913_v37, %v886_v25  ;;  %v946_v55 = vmul.f32 %v938_v49, %v928_v38 }
  0x5d   : > { %v952_v56 = vrot.slane %v943_v47, 2  ;;  %v979_v57 = vrot.slane %v2180_v34, 2  ;;  %v919_v58 = vmul.f32 %v915_v36, %v888_v30  ;;  %v953_v59 = vrot.slane %v944_v50, 2 }
  0x5e   : > { %v955_v63 = vrot.slane %v945_v51, 2  ;;  %vm951_vm8 = vcmask 1045504   ;;  %v956_v2 = vrot.slane %v946_v55, 2  ;;  %v991_v3 = vmul.f32 %v2178_v29, %v2520_v11 }
  0x5f   : > { %v954_v4 = vsel %vm951_vm8, %v952_v56, %v953_v59  ;;  %v963_v5 = vadd.f32 %v953_v59, %v918_v44  ;;  %v980_v6 = vsel %vm951_vm8, %v978_v53, %v979_v57  ;;  %v992_v7 = vmul.f32 %v2180_v34, %v2524_v12 }
  0x60   : > { %v957_v14 = vsel %vm951_vm8, %v955_v63, %v956_v2  ;;  %v962_v15 = vadd.f32 %v954_v4, %v917_v54  ;;  %v965_v16 = vadd.f32 %v956_v2, %v920_v45  ;;  %v993_v17 = vmul.f32 %v2178_v29, %v2528_v13 }
  0x61   : > { %v964_v18 = vadd.f32 %v957_v14, %v919_v58  ;;  %v984_v21 = vmul.f32 %v979_v57, %v2507_v1  ;;  %v986_v23 = vmul.f32 %v979_v57, %v2516_v10  ;;  %v1000_v24 = vrot.slane %v963_v5, 6 }
  0x62   : > { %v983_v25 = vmul.f32 %v980_v6, %v2497_v0  ;;  %v994_v26 = vmul.f32 %v2180_v34, %v2541_v19  ;;  %v999_v27 = vrot.slane %v962_v15, 6  ;;  %v1003_v28 = vrot.slane %v965_v16, 6 }
  0x63   : > { %v985_v30 = vmul.f32 %v980_v6, %v2549_v22  ;;  %v1002_v31 = vrot.slane %v964_v18, 6  ;;  %v1226_v32 = vrot.slane %v2583_v8, 7  ;;  %v1227_v33 = vrot.slane %v2585_v9, 7 }
  0x64   : > { %v1001_v29 = vsel %vm966_vm1, %v999_v27, %v1000_v24  ;;  %v1009_v35 = vmul.f32 %v999_v27, %v991_v3  ;;  %v1044_v37 = vrot.slane %v2570_v40, 3  ;;  %v1045_v38 = vrot.slane %v2573_v43, 3 }
  0x65   : > { %v988_v39 = vmul.f32 %v984_v21, %v963_v5  ;;  %v1004_v36 = vsel %vm966_vm1, %v1002_v31, %v1003_v28  ;;  %v1010_v34 = vmul.f32 %v1001_v29, %v992_v7  ;;  %v1011_v41 = vmul.f32 %v1002_v31, %v993_v17 }
  0x66   : > { %v987_v42 = vmul.f32 %v983_v25, %v962_v15  ;;  %v990_v44 = vmul.f32 %v986_v23, %v965_v16  ;;  %v1012_v45 = vmul.f32 %v1004_v36, %v994_v26  ;;  %v1018_v46 = vrot.slane %v1009_v35, 3 }
  0x67   : > { %v989_v47 = vmul.f32 %v985_v30, %v964_v18  ;;  %v1019_v49 = vrot.slane %v1010_v34, 3  ;;  %v1021_v50 = vrot.slane %v1011_v41, 3  ;;  %v1046_v53 = vsel %vm3265_vm9, %v1044_v37, %v1045_v38  ;;  %v1099_v30 = vld [vmem:[%s2621_s25 + $0x8] sm:$0x7]  ;;  %v1100_v37 = vld [vmem:[%s2621_s25 + $0x10] sm:$0xff] }
  0x68   : > { %v1022_v51 = vrot.slane %v1012_v45, 3  ;;  %v1228_v54 = vsel %vm892_vm0, %v1226_v32, %v1227_v33  ;;  %v1231_v55 = vsub.f32 %v2583_v8, %v1226_v32  ;;  %v1057_v58 = vmul.f32 %v2570_v40, %v2520_v11  ;;  %v1101_v32 = vld [vmem:[%s2621_s25 + $0x18] sm:$0x7]  ;;  %v1103_v33 = vld [vmem:[%s2621_s25 + $0x28] sm:$0x7] }
  0x69   : > { %v1020_v56 = vsel %vm3265_vm9, %v1018_v46, %v1019_v49  ;;  %v1029_v57 = vadd.f32 %v1019_v49, %v988_v39  ;;  %v1058_v59 = vmul.f32 %v2573_v43, %v2524_v12  ;;  %v1059_v4 = vmul.f32 %v2570_v40, %v2528_v13  ;;  %v1104_v39 = vld [vmem:[%s2621_s25 + $0x30] sm:$0xff]  ;;  %v1107_v45 = vld [vmem:[%s2621_s25 + $0x48] sm:$0x7] }
  0x6a   : > { %v1023_v63 = vsel %vm3265_vm9, %v1021_v50, %v1022_v51  ;;  %v1028_v2 = vadd.f32 %v1020_v56, %v987_v42  ;;  %v1031_v3 = vadd.f32 %v1022_v51, %v990_v44  ;;  %v1049_v6 = vmul.f32 %v1046_v53, %v2497_v0  ;;  %v1105_v42 = vld [vmem:[%s2621_s25 + $0x38] sm:$0x7]  ;;  %v1106_v44 = vld [vmem:[%s2621_s25 + $0x40] sm:$0xff]  ;;  %v1108_v49 = vld [vmem:[%s2621_s25 + $0x50] sm:$0xff] }
  0x6b   : > { %v1030_v5 = vadd.f32 %v1023_v63, %v989_v47  ;;  %v1050_v7 = vmul.f32 %v1045_v38, %v2507_v1  ;;  %v1066_v14 = vrot.slane %v1029_v57, 5  ;;  %v1052_v15 = vmul.f32 %v1045_v38, %v2516_v10  ;;  %v1102_v38 = vld [vmem:[%s2621_s25 + $0x20] sm:$0xff]  ;;  %v1109_v50 = vld [vmem:[%s2621_s25 + $0x58] sm:$0x7]  ;;  %v1111_v51 = vld [vmem:[%s2621_s25 + $0x68] sm:$0x7] }
  0x6c   : > { %v1060_v11 = vmul.f32 %v2573_v43, %v2541_v19  ;;  %v1065_v12 = vrot.slane %v1028_v2, 5  ;;  %v1069_v16 = vrot.slane %v1031_v3, 5  ;;  %v1051_v17 = vmul.f32 %v1046_v53, %v2549_v22  ;;  %v1098_v22 = vld [vmem:[%s2621_s25] sm:$0xff] }
  0x6d   : > { %v1068_v18 = vrot.slane %v1030_v5, 5  ;;  %v1232_v40 = vsub.f32 %v2585_v9, %v1228_v54  ;;  %2185 = vrcp.f32 %v1231_v55  ;;  %v1054_v0 = vmul.f32 %v1050_v7, %v1029_v57  ;;  %v1110_v56 = vld [vmem:[%s2621_s25 + $0x60] sm:$0xff] }
  0x6e   : > { %v1067_v21 = vsel %vm1032_vm2, %v1065_v12, %v1066_v14  ;;  %v1075_v13 = vmul.f32 %v1065_v12, %v1057_v58  ;;  %v1053_v10 = vmul.f32 %v1049_v6, %v1028_v2  ;;  %v1056_v25 = vmul.f32 %v1052_v15, %v1031_v3 }
  0x6f   : > { %v1070_v1 = vsel %vm1032_vm2, %v1068_v18, %v1069_v16  ;;  %v1076_v23 = vmul.f32 %v1067_v21, %v1058_v59  ;;  %v1077_v24 = vmul.f32 %v1068_v18, %v1059_v4  ;;  %v1055_v43 = vmul.f32 %v1051_v17, %v1030_v5 }
  0x70   : > { %v1078_v26 = vmul.f32 %v1070_v1, %v1060_v11  ;;  %v1084_v19 = vrot.slane %v1075_v13, 4  ;;  %vm1198_vm10 = vcmp.lt.f32.partialorder %v2481_v60, %v2583_v8  ;;  %vm3264_vm11 = vcmask 1043456   ;;  %v1113_v11 = vld [vmem:[%s2621_s25 + $0x78] sm:$0x7] }
  0x71   : > { %v1085_v27 = vrot.slane %v1076_v23, 4  ;;  %v1087_v28 = vrot.slane %v1077_v24, 4  ;;  %vm1199_vm12 = vcmp.lt.f32.partialorder %v2481_v60, %v2585_v9  ;;  %2187 = vrcp.f32 %v1232_v40 }
  0x72   : > { %v1088_v31 = vrot.slane %v1078_v26, 4  ;;  %vm1200_vm13 = vcmp.lt.f32.partialorder %v2484_v61, %v2583_v8  ;;  %vm1201_vm14 = vcmp.lt.f32.partialorder %v2484_v61, %v2585_v9  ;;  %v2647_v46 = vsel %vm1198_vm10, 1, %v2268_v62  ;;  %v1112_v26 = vld [vmem:[%s2621_s25 + $0x70] sm:$0xff]  ;;  %s2209_s25 = sshll.u32 %s2270_s24, 4  ;;  %s2210_s25 = int_to_ptr.vmem [resolvable:$false] %s2209_s25 }
  0x73   : > { %v1086_v29 = vsel %vm3264_vm11, %v1084_v19, %v1085_v27  ;;  %v1095_v35 = vadd.f32 %v1085_v27, %v1054_v0  ;;  %v1203_v63 = vsel %vm1199_vm12, 1, %v2268_v62  ;;  %v1204_v5 = vsel %vm1200_vm13, 1, %v2268_v62  ;;  %s2211_s13 = scalar_lea.vmem %s2210_s25, 128 }
  0x74   : > { %v1089_v36 = vsel %vm3264_vm11, %v1087_v28, %v1088_v31  ;;  %v1094_v34 = vadd.f32 %v1086_v29, %v1053_v10  ;;  %v1097_v41 = vadd.f32 %v1088_v31, %v1056_v25  ;;  %v1205_v28 = vsel %vm1201_vm14, 1, %v2268_v62 }
  0x75   : > { %v1096_v47 = vadd.f32 %v1089_v36, %v1055_v43  ;;  %v1115_v53 = vmul.f32 %v1099_v30, %v1095_v35  ;;  %v1117_v54 = vmul.f32 %v1101_v32, %v1095_v35  ;;  %v1119_v55 = vmul.f32 %v1103_v33, %v1095_v35 }
  0x76   : > { %v1114_v57 = vmul.f32 %v1098_v22, %v1094_v34  ;;  %v1116_v58 = vmul.f32 %v1100_v37, %v1094_v34  ;;  %v1118_v59 = vmul.f32 %v1102_v38, %v1094_v34  ;;  %v1120_v2 = vmul.f32 %v1104_v39, %v1094_v34 }
  0x77   : > { %v1121_v3 = vmul.f32 %v1105_v42, %v1095_v35  ;;  %v1123_v4 = vmul.f32 %v1107_v45, %v1097_v41  ;;  %v1122_v6 = vmul.f32 %v1106_v44, %v1096_v47  ;;  %v1124_v7 = vmul.f32 %v1108_v49, %v1096_v47 }
  0x78   : > { %v1125_v14 = vmul.f32 %v1109_v50, %v1097_v41  ;;  %v1127_v15 = vmul.f32 %v1111_v51, %v1097_v41  ;;  %v1126_v12 = vmul.f32 %v1110_v56, %v1096_v47  ;;  %v1130_v16 = vsel %vm1032_vm2, %v1115_v53, 0.0 }
  0x79   : > { %v1138_v17 = vsel %vm1032_vm2, %v1117_v54, 0.0  ;;  %v1146_v18 = vsel %vm1032_vm2, %v1119_v55, 0.0  ;;  %v1131_v21 = vadd.f32 %v1130_v16, %v1114_v57  ;;  %v1154_v0 = vsel %vm1032_vm2, %v1121_v3, 0.0 }
  0x7a   : > { %v1139_v13 = vadd.f32 %v1138_v17, %v1116_v58  ;;  %v1147_v40 = vadd.f32 %v1146_v18, %v1118_v59  ;;  %v2666_v1 = vpop.eup %2185  ;;  %v1155_v23 = vadd.f32 %v1154_v0, %v1120_v2  ;;  %v1162_v24 = vsel %vm1032_vm2, %v1123_v4, 0.0 }
  0x7b   : > { %v1170_v10 = vsel %vm1032_vm2, %v1125_v14, 0.0  ;;  %v1178_v25 = vsel %vm1032_vm2, %v1127_v15, 0.0  ;;  %v1129_v19 = vmul.f32 %v1113_v11, %v1097_v41  ;;  %v1132_v43 = vrot.slane %v1131_v21, 4 }
  0x7c   : > { %v1140_v27 = vrot.slane %v1139_v13, 4  ;;  %v1148_v22 = vrot.slane %v1147_v40, 4  ;;  %v1156_v30 = vrot.slane %v1155_v23, 4  ;;  %v1163_v31 = vadd.f32 %v1162_v24, %v1122_v6 }
  0x7d   : > { %v1171_v32 = vadd.f32 %v1170_v10, %v1124_v7  ;;  %v1179_v33 = vadd.f32 %v1178_v25, %v1126_v12  ;;  %v1298_v29 = vrot.slane %v2583_v8, 6  ;;  %v1299_v35 = vrot.slane %v2585_v9, 6 }
  0x7e   : > { %v2678_v37 = vpop.eup %2187  ;;  %v1128_v38 = vmul.f32 %v1112_v26, %v1096_v47  ;;  %v1133_v39 = vadd.f32 %v1132_v43, %v1131_v21  ;;  %v1206_v36 = vrot.slane %v2647_v46, 1  ;;  %v1207_v34 = vrot.slane %v1203_v63, 1 }
  0x7f   : > { %v1141_v41 = vadd.f32 %v1140_v27, %v1139_v13  ;;  %v1186_v42 = vsel %vm1032_vm2, %v1129_v19, 0.0  ;;  %v1209_v44 = vrot.slane %v1204_v5, 1  ;;  %v1210_v45 = vrot.slane %v1205_v28, 1 }
  0x80   : > { %v1149_v49 = vadd.f32 %v1148_v22, %v1147_v40  ;;  %v1157_v50 = vadd.f32 %v1156_v30, %v1155_v23  ;;  %v1164_v51 = vrot.slane %v1163_v31, 4  ;;  %v1172_v53 = vrot.slane %v1171_v32, 4 }
  0x81   : > { %v1180_v54 = vrot.slane %v1179_v33, 4  ;;  %v2683_v55 = vsel %vm966_vm1, %v1298_v29, %v1299_v35  ;;  %v2686_v56 = vsub.f32 %v2583_v8, %v1298_v29  ;;  %v1362_v47 = vrot.slane %v2583_v8, 5 }
  0x82   : > { %v1134_v46 = vrot.slane %v1133_v39, 2  ;;  %v2689_v57 = vadd.f32 %v1186_v42, %v1128_v38  ;;  %vm1195_vm15 = vcmp.ge.f32.partialorder %v2481_v60, %v2585_v9  ;;  %v1363_v58 = vrot.slane %v2585_v9, 5 }
  0x83   : > { %v1142_v59 = vrot.slane %v1141_v41, 2  ;;  %v1208_v63 = vsel %vm871_vm3, %v1206_v36, %v1207_v34  ;;  %v1211_v2 = vsel %vm871_vm3, %v1209_v44, %v1210_v45  ;;  %vm2696_vm5 = vcmp.ne.s32.totalorder %v1207_v34, 0 }
  0x84   : > { %v1150_v4 = vrot.slane %v1149_v49, 2  ;;  %v1158_v5 = vrot.slane %v1157_v50, 2  ;;  %v2700_v6 = vadd.f32 %v1164_v51, %v1163_v31  ;;  %v2702_v7 = vadd.f32 %v1172_v53, %v1171_v32  ;;  %vm1217_vm14 = vmand %vm1195_vm15, %vm2696_vm5 }
  0x85   : > { %v2704_v14 = vadd.f32 %v1180_v54, %v1179_v33  ;;  %vm1194_vm7 = vcmp.ge.f32.partialorder %v2481_v60, %v2583_v8  ;;  %vm1196_vm6 = vcmp.ge.f32.partialorder %v2484_v61, %v2583_v8  ;;  %vm1197_vm4 = vcmp.ge.f32.partialorder %v2484_v61, %v2585_v9  ;;  %v2806_v54 = vld [vmem:[%s815_s28] sm:$0x3]  ;;  %s1909_s28 = sshll.u32 %s807_s27, 4  ;;  %s1910_s28 = int_to_ptr.vmem [resolvable:$true] %s1909_s28 }
  0x86   : > { %v2712_v15 = vadd.f32 %v1134_v46, %v1133_v39  ;;  %v1188_v11 = vrot.slane %v2689_v57, 4  ;;  %v2717_v12 = vsub.f32 %v2481_v60, %v2583_v8  ;;  %v2721_v16 = vsub.f32 %v2481_v60, %v2585_v9  ;;  %s2205_s23 = scalar_lea.vmem %s1910_s28, 64  ;;  %p2212_p3 = scmp.lt.s32.totalorder %s1910_s28, %s2210_s25 }
  0x87   : > { %v2723_v17 = vadd.f32 %v1142_v59, %v1141_v41  ;;  %vm1212_vm10 = vcmp.ne.s32.totalorder %v1208_v63, 0  ;;  %vm1214_vm12 = vcmp.ne.s32.totalorder %v1211_v2, 0  ;;  %vm1215_vm13 = vcmp.ne.s32.totalorder %v1210_v45, 0  ;;  %p2206_p0 = scmp.ne.s32.totalorder %s1910_s28, %s2205_s23  ;;  %p2213_p4 = scmp.lt.s32.totalorder %s2211_s13, %s2205_s23 }
  0x88   : > { %v2730_v18 = vadd.f32 %v1150_v4, %v1149_v49  ;;  %v2732_v21 = vadd.f32 %v1158_v5, %v1157_v50  ;;  %v1166_v13 = vrot.slane %v2700_v6, 2  ;;  %v1174_v40 = vrot.slane %v2702_v7, 2  ;;  %vm1216_vm11 = vmand %vm1194_vm7, %vm1212_vm10 }
  0x89   : > { %v1182_v0 = vrot.slane %v2704_v14, 2  ;;  %vm1218_vm9 = vmand %vm1196_vm6, %vm1214_vm12  ;;  %v2745_v23 = vsub.f32 %v2484_v61, %v2583_v8  ;;  %v2749_v24 = vsub.f32 %v2484_v61, %v2585_v9  ;;  %v1241_v10 = vrot.slane %v2666_v1, 1  ;;  %p2207_p1 = pnand %p2206_p0, %p2364_p6  ;;  %p2214_p5 = por %p2213_p4, %p2212_p3 }
  0x8a   : > { %vm1219_vm15 = vmand %vm1197_vm4, %vm1215_vm13  ;;  %v1220_v25 = vsel %vm1216_vm11, 1.0, %v3266_v20  ;;  %v1221_v26 = vsel %vm1217_vm14, 1.0, %v3266_v20  ;;  %v2758_v19 = vrot.slane %v2678_v37, 1  ;;  %v2762_v43 = vsub.f32 %v2583_v8, %v2481_v60 }
  0x8b   : > { %v1222_v27 = vsel %vm1218_vm9, 1.0, %v3266_v20  ;;  %v2767_v28 = vsub.f32 %v2585_v9, %v2481_v60  ;;  %v2771_v22 = vsub.f32 %v2583_v8, %v2484_v61  ;;  %v2775_v30 = vsub.f32 %v2585_v9, %v2484_v61  ;;  %p2208_p2 = pneg %p2207_p1 }
  0x8c   : > { %v2779_v31 = vsel %vm871_vm3, %v1241_v10, %v2758_v19  ;;  %v1247_v32 = vmul.f32 %v2758_v19, %v2721_v16  ;;  %v1249_v33 = vmul.f32 %v2758_v19, %v2749_v24  ;;  %v1258_v60 = vmul.f32 %v2666_v1, %v2762_v43 }
  0x8d   : > { %v1223_v29 = vsel %vm1219_vm15, 1.0, %v3266_v20  ;;  %v1246_v35 = vmul.f32 %v2779_v31, %v2717_v12  ;;  %v1248_v61 = vmul.f32 %v2779_v31, %v2745_v23  ;;  %v1260_v38 = vmul.f32 %v2666_v1, %v2771_v22  ;;  %p2215_p7 = pnand %p2214_p5, %p2208_p2 }
  0x8e   : > { %v1251_v39 = vmul.f32 %v1247_v32, %v1221_v26  ;;  %v1253_v36 = vmul.f32 %v1249_v33, %v1223_v29  ;;  %v1259_v34 = vmul.f32 %v2678_v37, %v2767_v28  ;;  %v1266_v41 = vrot.slane %v1220_v25, 7 }
  0x8f   : > { %v1250_v42 = vmul.f32 %v1246_v35, %v1220_v25  ;;  %v1261_v44 = vmul.f32 %v2678_v37, %v2775_v30  ;;  %v1267_v45 = vrot.slane %v1221_v26, 7  ;;  %v1269_v49 = vrot.slane %v1222_v27, 7 }
  0x90   : > { %v1270_v50 = vrot.slane %v1223_v29, 7  ;;  %v1276_v51 = vmul.f32 %v1266_v41, %v1258_v60  ;;  %v1304_v53 = vsub.f32 %v2585_v9, %v2683_v55  ;;  %2189 = vrcp.f32 %v2686_v56 }
  0x91   : > { %v1268_v46 = vsel %vm892_vm0, %v1266_v41, %v1267_v45  ;;  %v1278_v59 = vmul.f32 %v1269_v49, %v1260_v38  ;;  %v1364_v63 = vsel %vm1032_vm2, %v1362_v47, %v1363_v58  ;;  %v1367_v2 = vsub.f32 %v2583_v8, %v1362_v47 }
  0x92   : > { %v1271_v3 = vsel %vm892_vm0, %v1269_v49, %v1270_v50  ;;  %v1277_v55 = vmul.f32 %v1268_v46, %v1259_v34  ;;  %v1284_v4 = vrot.slane %v1276_v51, 2  ;;  %2191 = vrcp.f32 %v1304_v53 }
  0x93   : > { %v1279_v56 = vmul.f32 %v1271_v3, %v1261_v44  ;;  %v1287_v5 = vrot.slane %v1278_v59, 2  ;;  %v1368_v10 = vsub.f32 %v2585_v9, %v1364_v63  ;;  %2193 = vrcp.f32 %v1367_v2 }
  0x94   : > { %v2820_v25 = vadd.f32 %v1188_v11, %v2689_v57  ;;  %v1252_v26 = vmul.f32 %v1248_v61, %v1222_v27  ;;  %v1285_v32 = vrot.slane %v1277_v55, 2  ;;  %v1515_v58 = vrot.slane %v2806_v54, %v2462_v48 }
  0x95   : > { %v1288_v60 = vrot.slane %v1279_v56, 2  ;;  %2195 = vrcp.f32 %v1368_v10  ;;  %v1803_v61 = vsub.f32 0.0, %v2806_v54  ;;  %v2852_v59 = vadd.f32 %v1182_v0, %v2704_v14 }
  0x96   : > { %v1286_v29 = vsel %vm951_vm8, %v1284_v4, %v1285_v32  ;;  %v1295_v35 = vadd.f32 %v1285_v32, %v1251_v39  ;;  %v1516_v38 = vcombine.high %v1515_v58, %v1515_v58  ;;  %v1523_v34 = vrot.slane %v1515_v58, %v2462_v48 }
  0x97   : > { %v1289_v57 = vsel %vm951_vm8, %v1287_v5, %v1288_v60  ;;  %v1294_v11 = vadd.f32 %v1286_v29, %v1250_v42  ;;  %v1297_v27 = vadd.f32 %v1288_v60, %v1253_v36  ;;  %v2838_v39 = vadd.f32 %v1166_v13, %v2700_v6 }
  0x98   : > { %v1296_v41 = vadd.f32 %v1289_v57, %v1252_v26  ;;  %v1331_v44 = vrot.slane %v1295_v35, 6  ;;  %v1530_v45 = vrot.slane %v1516_v38, %v2462_v48  ;;  %v2832_v49 = vrot.slane %v1523_v34, %v2473_v52 }
  0x99   : > { %v1330_v51 = vrot.slane %v1294_v11, 6  ;;  %v1334_v53 = vrot.slane %v1297_v27, 6  ;;  %v2844_v42 = vadd.f32 %v1174_v40, %v2702_v7  ;;  %v2858_v6 = vmul.f32 1.442695, %v1803_v61 }
  0x9a   : > { %v1333_v48 = vrot.slane %v1296_v41, 6  ;;  %v2847_v46 = vrot.slane %v1530_v45, %v2473_v52  ;;  %vm1545_vm9 = vcmp.lt.f32.partialorder %v2832_v49, %v2583_v8  ;;  %vm1546_vm11 = vcmp.lt.f32.partialorder %v2832_v49, %v2585_v9 }
  0x9b   : > { %v1332_v7 = vsel %vm966_vm1, %v1330_v51, %v1331_v44  ;;  %v2866_v40 = vsub.f32 %v2832_v49, %v2583_v8  ;;  %v2873_v0 = vsel %vm1545_vm9, 1, %v2268_v62  ;;  %v2876_v63 = vsel %vm1546_vm11, 1, %v2268_v62 }
  0x9c   : > { %v1335_v13 = vsel %vm966_vm1, %v1333_v48, %v1334_v53  ;;  %vm1547_vm5 = vcmp.lt.f32.partialorder %v2847_v46, %v2583_v8  ;;  %vm1548_vm7 = vcmp.lt.f32.partialorder %v2847_v46, %v2585_v9  ;;  %v1553_v10 = vrot.slane %v2873_v0, 1 }
  0x9d   : > { %v2868_v14 = vpop.eup %2189  ;;  %v2879_v2 = vsel %vm1547_vm5, 1, %v2268_v62  ;;  %v2887_v56 = vsel %vm1548_vm7, 1, %v2268_v62  ;;  %v1554_v26 = vrot.slane %v2876_v63, 1  ;;  %vm1541_vm6 = vcmp.ge.f32.partialorder %v2832_v49, %v2583_v8 }
  0x9e   : > { %v1309_v3 = vrot.slane %v2868_v14, 2  ;;  %v1322_v55 = vmul.f32 %v2868_v14, %v2762_v43  ;;  %v1324_v4 = vmul.f32 %v2868_v14, %v2771_v22  ;;  %v1556_v32 = vrot.slane %v2879_v2, 1 }
  0x9f   : > { %v2889_v5 = vpop.eup %2191  ;;  %v1557_v58 = vrot.slane %v2887_v56, 1  ;;  %vm1542_vm4 = vcmp.ge.f32.partialorder %v2832_v49, %v2585_v9  ;;  %vm1543_vm10 = vcmp.ge.f32.partialorder %v2847_v46, %v2583_v8  ;;  %vm3277_vm12 = vcmask 1044480  }
  0xa0   : > { %v2895_v60 = vpop.eup %2193  ;;  %v2898_v29 = vrot.slane %v2889_v5, 2  ;;  %v1323_v38 = vmul.f32 %v2889_v5, %v2767_v28  ;;  %v1325_v62 = vmul.f32 %v2889_v5, %v2775_v30  ;;  %v1340_v34 = vmul.f32 %v1330_v51, %v1322_v55  ;;  %vm3278_vm14 = vmmov %vm3277_vm12 }
  0xa1   : > { %v1342_v57 = vmul.f32 %v1333_v48, %v1324_v4  ;;  %v1373_v61 = vrot.slane %v2895_v60, 3  ;;  %v1386_v44 = vmul.f32 %v2895_v60, %v2762_v43  ;;  %v1388_v45 = vmul.f32 %v2895_v60, %v2771_v22  ;;  %vm3279_vm15 = vmmov %vm3277_vm12 }
  0xa2   : > { %v2909_v53 = vpop.eup %2195  ;;  %v2913_v0 = vsel %vm951_vm8, %v1309_v3, %v2898_v29  ;;  %v1315_v2 = vmul.f32 %v2898_v29, %v2721_v16  ;;  %v1317_v51 = vmul.f32 %v2898_v29, %v2749_v24  ;;  %v1341_v48 = vmul.f32 %v1332_v7, %v1323_v38 }
  0xa3   : > { %v1314_v55 = vmul.f32 %v2913_v0, %v2717_v12  ;;  %v1316_v43 = vmul.f32 %v2913_v0, %v2745_v23  ;;  %v1343_v22 = vmul.f32 %v1335_v13, %v1325_v62  ;;  %v1348_v4 = vrot.slane %v1340_v34, 3 }
  0xa4   : > { %v1319_v3 = vmul.f32 %v1315_v2, %v1295_v35  ;;  %v1321_v36 = vmul.f32 %v1317_v51, %v1297_v27  ;;  %v1349_v50 = vrot.slane %v1341_v48, 3  ;;  %v1351_v33 = vrot.slane %v1342_v57, 3 }
  0xa5   : > { %v1318_v20 = vmul.f32 %v1314_v55, %v1294_v11  ;;  %v1320_v7 = vmul.f32 %v1316_v43, %v1296_v41  ;;  %v1352_v38 = vrot.slane %v1343_v22, 3  ;;  %v2928_v47 = vrot.slane %v2909_v53, 3 }
  0xa6   : > { %v1350_v13 = vsel %vm3277_vm12, %v1348_v4, %v1349_v50  ;;  %v1359_v62 = vadd.f32 %v1349_v50, %v1319_v3  ;;  %v1387_v35 = vmul.f32 %v2909_v53, %v2767_v28  ;;  %v1389_v27 = vmul.f32 %v2909_v53, %v2775_v30 }
  0xa7   : > { %vm1544_vm13 = vcmp.ge.f32.partialorder %v2847_v46, %v2585_v9  ;;  %v1353_v11 = vsel %vm3278_vm14, %v1351_v33, %v1352_v38  ;;  %v1358_v41 = vadd.f32 %v1350_v13, %v1318_v20  ;;  %v1361_v34 = vadd.f32 %v1352_v38, %v1321_v36 }
  0xa8   : > { %v2942_v57 = vsel %vm3279_vm15, %v1373_v61, %v2928_v47  ;;  %v1360_v2 = vadd.f32 %v1353_v11, %v1320_v7  ;;  %v1379_v28 = vmul.f32 %v2928_v47, %v2721_v16  ;;  %v1381_v51 = vmul.f32 %v2928_v47, %v2749_v24 }
  0xa9   : > { %v1378_v50 = vmul.f32 %v2942_v57, %v2717_v12  ;;  %v1380_v30 = vmul.f32 %v2942_v57, %v2745_v23  ;;  %v1394_v33 = vrot.slane %v1358_v41, 5  ;;  %v1395_v20 = vrot.slane %v1359_v62, 5 }
  0xaa   : > { %v1398_v36 = vrot.slane %v1361_v34, 5  ;;  %v1383_v55 = vmul.f32 %v1379_v28, %v1359_v62  ;;  %v1397_v43 = vrot.slane %v1360_v2, 5  ;;  %v1385_v22 = vmul.f32 %v1381_v51, %v1361_v34 }
  0xab   : > { %v1382_v48 = vmul.f32 %v1378_v50, %v1358_v41  ;;  %v1384_v61 = vmul.f32 %v1380_v30, %v1360_v2  ;;  %v1396_v4 = vsel %vm1032_vm2, %v1394_v33, %v1395_v20  ;;  %v1404_v12 = vmul.f32 %v1394_v33, %v1386_v44 }
  0xac   : > { %v1555_v16 = vsel %vm871_vm3, %v1553_v10, %v1554_v26  ;;  %v1399_v23 = vsel %vm1032_vm2, %v1397_v43, %v1398_v36  ;;  %v1405_v3 = vmul.f32 %v1396_v4, %v1387_v35  ;;  %v1406_v7 = vmul.f32 %v1397_v43, %v1388_v45 }
  0xad   : > { %v1558_v24 = vsel %vm871_vm3, %v1556_v32, %v1557_v58  ;;  %v1407_v38 = vmul.f32 %v1399_v23, %v1389_v27  ;;  %v1412_v13 = vrot.slane %v1404_v12, 4  ;;  %vm1559_vm9 = vcmp.ne.s32.totalorder %v1555_v16, 0 }
  0xae   : > { %vm1560_vm11 = vcmp.ne.s32.totalorder %v1554_v26, 0  ;;  %v1413_v62 = vrot.slane %v1405_v3, 4  ;;  %v1415_v44 = vrot.slane %v1406_v7, 4  ;;  %vm1561_vm5 = vcmp.ne.s32.totalorder %v1558_v24, 0  ;;  %vm2971_vm12 = vmand %vm1541_vm6, %vm1559_vm9 }
  0xaf   : > { %vm2964_vm7 = vcmp.ne.s32.totalorder %v1557_v58, 0  ;;  %v3284_v63 = vrot.slane %v2712_v15, 1  ;;  %v1416_v35 = vrot.slane %v1407_v38, 4  ;;  %vm2984_vm3 = vmand %vm1542_vm4, %vm1560_vm11  ;;  %2197 = vpow2.f32 %v2858_v6 }
  0xb0   : > { %vm3287_vm6 = vcmask 1043456   ;;  %v2990_v27 = vadd.f32 %v1413_v62, %v1383_v55  ;;  %vm1565_vm14 = vmand %vm1543_vm10, %vm1561_vm5  ;;  %v3001_v11 = vsub.f32 %v2847_v46, %v2583_v8  ;;  %v3015_v2 = vsub.f32 %v2847_v46, %v2585_v9 }
  0xb1   : > { %v2978_v26 = vadd.f32 %v3284_v63, %v2712_v15  ;;  %v1414_v58 = vsel %vm3287_vm6, %v1412_v13, %v1413_v62  ;;  %v2997_v15 = vsub.f32 %v2832_v49, %v2585_v9  ;;  %vm3288_vm4 = vmmov %vm3287_vm6  ;;  %v3006_v6 = vadd.f32 %v1416_v35, %v1385_v22 }
  0xb2   : > { %v1417_v41 = vsel %vm3288_vm4, %v1415_v44, %v1416_v35  ;;  %v3004_v34 = vadd.f32 %v1414_v58, %v1382_v48  ;;  %vm1566_vm10 = vmand %vm1544_vm13, %vm2964_vm7  ;;  %v1427_v28 = vmul.f32 %v2990_v27, %v2990_v27  ;;  %v3289_v30 = vmov 0.0  }
  0xb3   : > { %v3017_v50 = vadd.f32 %v1417_v41, %v1384_v61  ;;  %v1567_v51 = vsel %vm2971_vm12, 1.0, %v3289_v30  ;;  %v1575_v33 = vmul.f32 %v2866_v40, %v2779_v31  ;;  %v1429_v36 = vmul.f32 %v3006_v6, %v3006_v6  ;;  %vm3296_vm9 = vmmov %vm3288_vm4 }
  0xb4   : > { %v1426_v20 = vmul.f32 %v3004_v34, %v3004_v34  ;;  %v1568_v48 = vsel %vm2984_vm3, 1.0, %v3289_v30  ;;  %v1569_v55 = vsel %vm1565_vm14, 1.0, %v3289_v30  ;;  %v1430_v43 = vsel %vm1032_vm2, %v1427_v28, 0.0  ;;  %vm3297_vm11 = vmmov %vm3288_vm4 }
  0xb5   : > { %v1428_v61 = vmul.f32 %v3017_v50, %v3017_v50  ;;  %v1570_v22 = vsel %vm1566_vm10, 1.0, %v3289_v30  ;;  %v1576_v4 = vmul.f32 %v2997_v15, %v2758_v19  ;;  %v1438_v16 = vsel %vm1032_vm2, %v1429_v36, 0.0 }
  0xb6   : > { %v1431_v12 = vadd.f32 %v1430_v43, %v1426_v20  ;;  %v1577_v23 = vmul.f32 %v3001_v11, %v2779_v31  ;;  %v1578_v3 = vmul.f32 %v3015_v2, %v2758_v19  ;;  %v1579_v24 = vmul.f32 %v1575_v33, %v1567_v51 }
  0xb7   : > { %v1439_v7 = vadd.f32 %v1438_v16, %v1428_v61  ;;  %v3047_v38 = vsub.f32 %v2583_v8, %v2832_v49  ;;  %v3051_v13 = vsub.f32 %v2585_v9, %v2832_v49  ;;  %v3055_v44 = vsub.f32 %v2583_v8, %v2847_v46 }
  0xb8   : > { %v1432_v62 = vrot.slane %v1431_v12, 4  ;;  %v3059_v31 = vsub.f32 %v2585_v9, %v2847_v46  ;;  %v1595_v19 = vrot.slane %v1567_v51, 7  ;;  %v1596_v35 = vrot.slane %v1568_v48, 7 }
  0xb9   : > { %v1440_v10 = vrot.slane %v1439_v7, 4  ;;  %v1587_v32 = vmul.f32 %v2666_v1, %v3047_v38  ;;  %v1588_v63 = vmul.f32 %v2678_v37, %v3051_v13  ;;  %v1589_v56 = vmul.f32 %v2666_v1, %v3055_v44 }
  0xba   : > { %v1433_v49 = vadd.f32 %v1432_v62, %v1431_v12  ;;  %v1590_v8 = vmul.f32 %v2678_v37, %v3059_v31  ;;  %v1598_v58 = vrot.slane %v1569_v55, 7  ;;  %v1597_v9 = vsel %vm892_vm0, %v1595_v19, %v1596_v35 }
  0xbb   : > { %v1441_v41 = vadd.f32 %v1440_v10, %v1439_v7  ;;  %v1599_v46 = vrot.slane %v1570_v22, 7  ;;  %v1605_v28 = vmul.f32 %v1595_v19, %v1587_v32  ;;  %v1580_v51 = vmul.f32 %v1576_v4, %v1568_v48 }
  0xbc   : > { %v1434_v30 = vrot.slane %v1433_v49, 2  ;;  %v1606_v33 = vmul.f32 %v1597_v9, %v1588_v63  ;;  %v1607_v20 = vmul.f32 %v1598_v58, %v1589_v56  ;;  %v2198_v36 = vpop.eup %2197  ;;  %v1582_v43 = vmul.f32 %v1578_v3, %v1570_v22 }
  0xbd   : > { %v1442_v61 = vrot.slane %v1441_v41, 2  ;;  %v1600_v12 = vsel %vm892_vm0, %v1598_v58, %v1599_v46  ;;  %v1613_v16 = vrot.slane %v1605_v28, 2  ;;  %v3290_v7 = vrot.slane %v2723_v17, 1  ;;  %vm3294_vm0 = vmmov %vm3279_vm15 }
  0xbe   : > { %v1435_v1 = vadd.f32 %v1434_v30, %v1433_v49  ;;  %v1608_v62 = vmul.f32 %v1600_v12, %v1590_v8  ;;  %v1614_v45 = vrot.slane %v1606_v33, 2  ;;  %v1616_v37 = vrot.slane %v1607_v20, 2 }
  0xbf   : > { %v3074_v10 = vadd.f32 %v3290_v7, %v2723_v17  ;;  %v3291_v48 = vrot.slane %v2730_v18, 1  ;;  %v1443_v19 = vadd.f32 %v1442_v61, %v1441_v41  ;;  %v1581_v32 = vmul.f32 %v1577_v23, %v1569_v55 }
  0xc0   : > { %v1168_v22 = vrot.slane %v2838_v39, 1  ;;  %v1436_v3 = vrot.slane %v1435_v1, 1  ;;  %v1615_v63 = vsel %vm951_vm8, %v1613_v16, %v1614_v45  ;;  %v1617_v35 = vrot.slane %v1608_v62, 2 }
  0xc1   : > { %v3079_v4 = vadd.f32 %v3291_v48, %v2730_v18  ;;  %v3292_v49 = vrot.slane %v2732_v21, 1  ;;  %v1444_v17 = vrot.slane %v1443_v19, 1  ;;  %v1623_v8 = vadd.f32 %v1615_v63, %v1579_v24 }
  0xc2   : > { %v1624_v58 = vadd.f32 %v1614_v45, %v1580_v51  ;;  %v3088_v9 = vadd.f32 %v1436_v3, %v1435_v1  ;;  %v1618_v18 = vsel %vm951_vm8, %v1616_v37, %v1617_v35  ;;  %v1626_v41 = vadd.f32 %v1617_v35, %v1582_v43  ;;  %vm3295_vm8 = vmmov %vm3294_vm0 }
  0xc3   : > { %v3086_v56 = vadd.f32 %v3292_v49, %v2732_v21  ;;  %v1635_v55 = vmul.f32 %v2868_v14, %v3047_v38  ;;  %v3093_v23 = vadd.f32 %v1444_v17, %v1443_v19  ;;  %v1625_v46 = vadd.f32 %v1618_v18, %v1581_v32 }
  0xc4   : > { %v1627_v28 = vmul.f32 %v2866_v40, %v2913_v0  ;;  %v1628_v21 = vmul.f32 %v2997_v15, %v2898_v29  ;;  %2199 = vrcp.f32 %v3088_v9  ;;  %v1636_v45 = vmul.f32 %v2889_v5, %v3051_v13 }
  0xc5   : > { %v1637_v24 = vmul.f32 %v2868_v14, %v3055_v44  ;;  %v1643_v30 = vrot.slane %v1623_v8, 6  ;;  %2201 = vrcp.f32 %v3093_v23  ;;  %v1630_v51 = vmul.f32 %v3015_v2, %v2898_v29 }
  0xc6   : > { %v1638_v33 = vmul.f32 %v2889_v5, %v3059_v31  ;;  %v1644_v20 = vrot.slane %v1624_v58, 6  ;;  %v1629_v61 = vmul.f32 %v3001_v11, %v2913_v0  ;;  %v1646_v43 = vrot.slane %v1625_v46, 6 }
  0xc7   : > { %v1647_v12 = vrot.slane %v1626_v41, 6  ;;  %v1653_v16 = vmul.f32 %v1643_v30, %v1635_v55  ;;  %v1176_v1 = vrot.slane %v2844_v42, 1  ;;  %v3293_v14 = vrot.slane %v2820_v25, 2 }
  0xc8   : > { %v1632_v37 = vmul.f32 %v1628_v21, %v1624_v58  ;;  %v1645_v7 = vsel %vm966_vm1, %v1643_v30, %v1644_v20  ;;  %v1655_v5 = vmul.f32 %v1646_v43, %v1637_v24  ;;  %v1184_v32 = vrot.slane %v2852_v59, 1 }
  0xc9   : > { %v1191_v62 = vadd.f32 %v3293_v14, %v2820_v25  ;;  %v1648_v29 = vsel %vm966_vm1, %v1646_v43, %v1647_v12  ;;  %v1654_v48 = vmul.f32 %v1645_v7, %v1636_v45  ;;  %v1661_v19 = vrot.slane %v1653_v16, 3 }
  0xca   : > { %v1631_v0 = vmul.f32 %v1627_v28, %v1623_v8  ;;  %v1634_v3 = vmul.f32 %v1630_v51, %v1626_v41  ;;  %v1656_v63 = vmul.f32 %v1648_v29, %v1638_v33  ;;  %v1633_v35 = vmul.f32 %v1629_v61, %v1625_v46 }
  0xcb   : > { %v1662_v49 = vrot.slane %v1654_v48, 3  ;;  %v1664_v17 = vrot.slane %v1655_v5, 3  ;;  %v1806_v18 = vadd.f32 1.0, %v2198_v36  ;;  %v1169_v55 = vadd.f32 %v1168_v22, %v2838_v39 }
  0xcc   : > { %v1177_v25 = vadd.f32 %v1176_v1, %v2844_v42  ;;  %v1192_v58 = vrot.slane %v1191_v62, 1  ;;  %v1665_v21 = vrot.slane %v1656_v63, 3  ;;  %v1675_v24 = vmul.f32 %v2866_v40, %v2942_v57 }
  0xcd   : > { %v1663_v30 = vsel %vm3294_vm0, %v1661_v19, %v1662_v49  ;;  %v1672_v45 = vadd.f32 %v1662_v49, %v1632_v37  ;;  %2203 = vrcp.f32 %v1806_v18  ;;  %v1676_v46 = vmul.f32 %v2997_v15, %v2928_v47 }
  0xce   : > { %v1666_v8 = vsel %vm3295_vm8, %v1664_v17, %v1665_v21  ;;  %v1671_v41 = vadd.f32 %v1663_v30, %v1631_v0  ;;  %v1678_v39 = vmul.f32 %v3015_v2, %v2928_v47  ;;  %v1185_v42 = vadd.f32 %v1184_v32, %v2852_v59 }
  0xcf   : > { %v1673_v36 = vadd.f32 %v1666_v8, %v1633_v35  ;;  %v1674_v22 = vadd.f32 %v1665_v21, %v1634_v3  ;;  %v1692_v28 = vrot.slane %v1672_v45, 5  ;;  %v1193_v51 = vadd.f32 %v1192_v58, %v1191_v62 }
  0xd0   : > { %vm1446_vm13 = vcmp.gt.f32.partialorder %v3088_v9, 0.0  ;;  %vm1447_vm15 = vcmp.gt.f32.partialorder %v3093_v23, 0.0  ;;  %v1691_v40 = vrot.slane %v1671_v41, 5  ;;  %v1677_v33 = vmul.f32 %v3001_v11, %v2942_v57 }
  0xd1   : > { %v1683_v15 = vmul.f32 %v2895_v60, %v3047_v38  ;;  %v1684_v47 = vmul.f32 %v2909_v53, %v3051_v13  ;;  %v1685_v59 = vmul.f32 %v2895_v60, %v3055_v44  ;;  %v2200_v2 = vpop.eup %2199  ;;  %v1679_v20 = vmul.f32 %v1675_v24, %v1671_v41 }
  0xd2   : > { %v1680_v61 = vmul.f32 %v1676_v46, %v1672_v45  ;;  %v1682_v9 = vmul.f32 %v1678_v39, %v1674_v22  ;;  %v1686_v43 = vmul.f32 %v2909_v53, %v3059_v31  ;;  %v2202_v12 = vpop.eup %2201  ;;  %v1450_v16 = vsel %vm1446_vm13, %v2200_v2, 0.0  ;;  %v1813_v46 = vld [vmem:[%s3172_s14] sm:$0x3] }
  0xd3   : > { %v1693_v57 = vsel %vm1032_vm2, %v1691_v40, %v1692_v28  ;;  %v1694_v11 = vrot.slane %v1673_v36, 5  ;;  %v1695_v38 = vrot.slane %v1674_v22, 5  ;;  %v1451_v13 = vsel %vm1447_vm15, %v2202_v12, 0.0 }
  0xd4   : > { %v1452_v1 = vmul.f32 %v1450_v16, %v2978_v26  ;;  %v1453_v60 = vmul.f32 %v1450_v16, %v3074_v10  ;;  %v1454_v44 = vmul.f32 %v1450_v16, %v3079_v4  ;;  %v1455_v14 = vmul.f32 %v1450_v16, %v3086_v56 }
  0xd5   : > { %v1456_v62 = vmul.f32 %v1451_v13, %v1169_v55  ;;  %v1457_v37 = vmul.f32 %v1451_v13, %v1177_v25  ;;  %v1458_v53 = vmul.f32 %v1451_v13, %v1185_v42  ;;  %v1459_v31 = vmul.f32 %v1451_v13, %v1193_v51 }
  0xd6   : > { %v1463_v7 = vrot.slane %v1452_v1, %v2473_v52  ;;  %v1467_v29 = vrot.slane %v1453_v60, %v2473_v52  ;;  %v1471_v23 = vrot.slane %v1454_v44, %v2473_v52  ;;  %v1475_v26 = vrot.slane %v1455_v14, %v2473_v52 }
  0xd7   : > { %v1479_v10 = vrot.slane %v1456_v62, %v2473_v52  ;;  %v1681_v48 = vmul.f32 %v1677_v33, %v1673_v36  ;;  %v1701_v4 = vmul.f32 %v1691_v40, %v1683_v15  ;;  %v1483_v56 = vrot.slane %v1457_v37, %v2473_v52 }
  0xd8   : > { %v1696_v5 = vsel %vm1032_vm2, %v1694_v11, %v1695_v38  ;;  %v1702_v19 = vmul.f32 %v1693_v57, %v1684_v47  ;;  %v1703_v32 = vmul.f32 %v1694_v11, %v1685_v59  ;;  %v1487_v0 = vrot.slane %v1458_v53, %v2473_v52 }
  0xd9   : > { %v1491_v3 = vrot.slane %v1459_v31, %v2473_v52  ;;  %v1492_v63 = vmul.f32 %v1463_v7, %v3004_v34  ;;  %v1493_v35 = vmul.f32 %v1463_v7, %v2990_v27  ;;  %v1494_v17 = vmul.f32 %v1467_v29, %v3004_v34 }
  0xda   : > { %v2204_v49 = vpop.eup %2203  ;;  %v1495_v18 = vmul.f32 %v1467_v29, %v2990_v27  ;;  %v1496_v55 = vmul.f32 %v1471_v23, %v3004_v34  ;;  %v1497_v25 = vmul.f32 %v1471_v23, %v2990_v27  ;;  %v1498_v58 = vmul.f32 %v1475_v26, %v3004_v34 }
  0xdb   : > { %v1499_v21 = vmul.f32 %v1475_v26, %v2990_v27  ;;  %v1500_v52 = vmul.f32 %v1479_v10, %v3017_v50  ;;  %v1501_v30 = vmul.f32 %v1479_v10, %v3006_v6  ;;  %v1502_v45 = vmul.f32 %v1483_v56, %v3017_v50 }
  0xdc   : > { %v1704_v24 = vmul.f32 %v1696_v5, %v1686_v43  ;;  %v1709_v8 = vrot.slane %v1701_v4, 4  ;;  %v1710_v41 = vrot.slane %v1702_v19, 4  ;;  %v1503_v39 = vmul.f32 %v1483_v56, %v3006_v6 }
  0xdd   : > { %v1504_v42 = vmul.f32 %v1487_v0, %v3017_v50  ;;  %v1712_v34 = vrot.slane %v1703_v32, 4  ;;  %v3178_v27 = vmul.f32 %v2204_v49, %v2806_v54  ;;  %v1505_v36 = vmul.f32 %v1487_v0, %v3006_v6 }
  0xde   : > { %v1711_v22 = vsel %vm3296_vm9, %v1709_v8, %v1710_v41  ;;  %v1713_v28 = vrot.slane %v1704_v24, 4  ;;  %v1720_v51 = vadd.f32 %v1710_v41, %v1680_v61  ;;  %v1506_v40 = vmul.f32 %v1491_v3, %v3017_v50 }
  0xdf   : > { %v1507_v33 = vmul.f32 %v1491_v3, %v3006_v6  ;;  %v1719_v15 = vadd.f32 %v1711_v22, %v1679_v20  ;;  %v3185_v47 = vmul.f32 %v1813_v46, %v3178_v27  ;;  %vm1833_vm5 = vcmask 1041409  }
  0xe0   : > { %v1714_v59 = vsel %vm3297_vm11, %v1712_v34, %v1713_v28  ;;  %v1722_v2 = vadd.f32 %v1713_v28, %v1682_v9  ;;  %v1724_v43 = vmul.f32 %v1720_v51, %v1493_v35  ;;  %v1728_v54 = vmul.f32 %v1720_v51, %v1497_v25 }
  0xe1   : > { %v1721_v12 = vadd.f32 %v1714_v59, %v1681_v48  ;;  %v1723_v16 = vmul.f32 %v1719_v15, %v1492_v63  ;;  %v1727_v57 = vmul.f32 %v1719_v15, %v1496_v55  ;;  %v1731_v11 = vmul.f32 %v1719_v15, %v1500_v52 }
  0xe2   : > { %v1726_v38 = vmul.f32 %v1722_v2, %v1495_v18  ;;  %v1730_v13 = vmul.f32 %v1722_v2, %v1499_v21  ;;  %v1732_v61 = vmul.f32 %v1720_v51, %v1501_v30  ;;  %v1734_v1 = vmul.f32 %v1722_v2, %v1503_v39 }
  0xe3   : > { %v1725_v50 = vmul.f32 %v1721_v12, %v1494_v17  ;;  %v1729_v60 = vmul.f32 %v1721_v12, %v1498_v58  ;;  %v1733_v6 = vmul.f32 %v1721_v12, %v1502_v45  ;;  %v1735_v20 = vmul.f32 %v1719_v15, %v1504_v42 }
  0xe4   : > { %v1736_v44 = vmul.f32 %v1720_v51, %v1505_v36  ;;  %v1737_v14 = vmul.f32 %v1721_v12, %v1506_v40  ;;  %v1738_v62 = vmul.f32 %v1722_v2, %v1507_v33  ;;  %v1739_v37 = vsel %vm1032_vm2, %v1724_v43, 0.0 }
  0xe5   : > { %v1740_v9 = vadd.f32 %v1739_v37, %v1723_v16  ;;  %v1747_v53 = vsel %vm1032_vm2, %v1726_v38, 0.0  ;;  %v1755_v31 = vsel %vm1032_vm2, %v1728_v54, 0.0  ;;  %v1763_v7 = vsel %vm1032_vm2, %v1730_v13, 0.0 }
  0xe6   : > { %v1748_v29 = vadd.f32 %v1747_v53, %v1725_v50  ;;  %v1756_v23 = vadd.f32 %v1755_v31, %v1727_v57  ;;  %v1764_v26 = vadd.f32 %v1763_v7, %v1729_v60  ;;  %v1771_v10 = vsel %vm1032_vm2, %v1732_v61, 0.0  ;;  %v1814_v57 = vld [vmem:[%s3172_s14 + $0x2] sm:$0x3] }
  0xe7   : > { %v1741_v48 = vrot.slane %v1740_v9, 4  ;;  %v1772_v4 = vadd.f32 %v1771_v10, %v1731_v11  ;;  %v1779_v56 = vsel %vm1032_vm2, %v1734_v1, 0.0  ;;  %v1787_v5 = vsel %vm1032_vm2, %v1736_v44, 0.0  ;;  %v1815_v1 = vld [vmem:[%s3172_s14 + $0x4] sm:$0x3] }
  0xe8   : > { %v1749_v19 = vrot.slane %v1748_v29, 4  ;;  %v1757_v32 = vrot.slane %v1756_v23, 4  ;;  %v1765_v0 = vrot.slane %v1764_v26, 4  ;;  %v1780_v3 = vadd.f32 %v1779_v56, %v1733_v6  ;;  %v1821_v44 = vld [vmem:[%s736_s16] sm:$0x3] }
  0xe9   : > { %v1742_v63 = vadd.f32 %v1741_v48, %v1740_v9  ;;  %v1773_v35 = vrot.slane %v1772_v4, 4  ;;  %v1788_v49 = vadd.f32 %v1787_v5, %v1735_v20  ;;  %v1795_v17 = vsel %vm1032_vm2, %v1738_v62, 0.0 }
  0xea   : > { %v1750_v18 = vadd.f32 %v1749_v19, %v1748_v29  ;;  %v1758_v55 = vadd.f32 %v1757_v32, %v1756_v23  ;;  %v1766_v25 = vadd.f32 %v1765_v0, %v1764_v26  ;;  %v1781_v58 = vrot.slane %v1780_v3, 4  ;;  %v1823_v29 = vld [vmem:[%s736_s16 + $0x4] sm:$0x3]  ;;  %v1809_v19 = vld [vmem:[%s743_s17] sm:$0x3] }
  0xeb   : > { %v1743_v21 = vrot.slane %v1742_v63, 2  ;;  %v1774_v52 = vadd.f32 %v1773_v35, %v1772_v4  ;;  %v1789_v30 = vrot.slane %v1788_v49, 4  ;;  %v1796_v45 = vadd.f32 %v1795_v17, %v1737_v14  ;;  %v1822_v14 = vld [vmem:[%s736_s16 + $0x2] sm:$0x3]  ;;  %v1816_v4 = vld [vmem:[%s3172_s14 + $0x6] sm:$0x3] }
  0xec   : > { %v1751_v24 = vrot.slane %v1750_v18, 2  ;;  %v1759_v8 = vrot.slane %v1758_v55, 2  ;;  %v1767_v41 = vrot.slane %v1766_v25, 2  ;;  %v1782_v46 = vadd.f32 %v1781_v58, %v1780_v3  ;;  %v1810_v32 = vld [vmem:[%s743_s17 + $0x2] sm:$0x3] }
  0xed   : > { %v1744_v39 = vadd.f32 %v1743_v21, %v1742_v63  ;;  %v1775_v42 = vrot.slane %v1774_v52, 2  ;;  %v1790_v34 = vadd.f32 %v1789_v30, %v1788_v49  ;;  %v1797_v36 = vrot.slane %v1796_v45, 4  ;;  %v1824_v63 = vld [vmem:[%s736_s16 + $0x6] sm:$0x3]  ;;  %s1907_s16 = scalar_lea.hbm %s3263_s9, %s2128_s18 }
  0xee   : > { %v1752_v22 = vadd.f32 %v1751_v24, %v1750_v18  ;;  %v1760_v28 = vadd.f32 %v1759_v8, %v1758_v55  ;;  %v1768_v51 = vadd.f32 %v1767_v41, %v1766_v25  ;;  %v1783_v40 = vrot.slane %v1782_v46, 2  ;;  %v1811_v18 = vld [vmem:[%s743_s17 + $0x4] sm:$0x3] }
  0xef   : > { %v1745_v33 = vrot.slane %v1744_v39, 1  ;;  %v1776_v15 = vadd.f32 %v1775_v42, %v1774_v52  ;;  %v1791_v59 = vrot.slane %v1790_v34, 2  ;;  %v1798_v2 = vadd.f32 %v1797_v36, %v1796_v45  ;;  %v1812_v45 = vld [vmem:[%s743_s17 + $0x6] sm:$0x3]  ;;  %s1896_s17 = scalar_lea.sflag [#allocation9], %s2438_s19 }
  0xf0   : > { %v1753_v43 = vrot.slane %v1752_v22, 1  ;;  %v1761_v54 = vrot.slane %v1760_v28, 1  ;;  %v1769_v12 = vrot.slane %v1768_v51, 1  ;;  %v1784_v16 = vadd.f32 %v1783_v40, %v1782_v46 }
  0xf1   : > { %v1746_v11 = vadd.f32 %v1745_v33, %v1744_v39  ;;  %v1777_v38 = vrot.slane %v1776_v15, 1  ;;  %v1792_v13 = vadd.f32 %v1791_v59, %v1790_v34  ;;  %v1799_v61 = vrot.slane %v1798_v2, 2 }
  0xf2   : > { %v1754_v50 = vadd.f32 %v1753_v43, %v1752_v22  ;;  %v1762_v60 = vadd.f32 %v1761_v54, %v1760_v28  ;;  %v1770_v6 = vadd.f32 %v1769_v12, %v1768_v51  ;;  %v1785_v20 = vrot.slane %v1784_v16, 1 }
  0xf3   : > { %v1778_v62 = vadd.f32 %v1777_v38, %v1776_v15  ;;  %v1793_v37 = vrot.slane %v1792_v13, 1  ;;  %v1800_v9 = vadd.f32 %v1799_v61, %v1798_v2  ;;  %v1818_v53 = vmul.f32 %v1814_v57, %v3178_v27 }
  0xf4   : > { %v1786_v31 = vadd.f32 %v1785_v20, %v1784_v16  ;;  %v1819_v7 = vmul.f32 %v1815_v1, %v3178_v27  ;;  %v1834_v23 = vsel %vm1833_vm5, %v1754_v50, %v1746_v11  ;;  %v1835_v26 = vsel %vm1833_vm5, %v1770_v6, %v1762_v60 }
  0xf5   : > { %v1794_v10 = vadd.f32 %v1793_v37, %v1792_v13  ;;  %v1801_v48 = vrot.slane %v1800_v9, 1  ;;  %v1842_v56 = vmul.f32 %v1834_v23, %v1821_v44  ;;  %v1843_v5 = vmul.f32 %v1835_v26, %v1822_v14  ;;  %v1854_v44 = vld [vmem:[%s819_s26] sm:$0xf] }
  0xf6   : > { %v1836_v0 = vsel %vm1833_vm5, %v1786_v31, %v1778_v62  ;;  %v1820_v55 = vmul.f32 %v1816_v4, %v3178_v27  ;;  %vm1888_vm2 = vcmask 1042434  }
  0xf7   : > { %v1802_v3 = vadd.f32 %v1801_v48, %v1800_v9  ;;  %v1844_v35 = vmul.f32 %v1836_v0, %v1823_v29  ;;  %v1846_v49 = vadd.f32 %v1842_v56, %v3185_v47  ;;  %v1847_v17 = vadd.f32 %v1843_v5, %v1818_v53 }
  0xf9   : > { %v1837_v25 = vsel %vm1833_vm5, %v1802_v3, %v1794_v10  ;;  %v1848_v58 = vadd.f32 %v1844_v35, %v1819_v7  ;;  %v1850_v21 = vmul.f32 %v1846_v49, %v1809_v19  ;;  %v1851_v52 = vmul.f32 %v1847_v17, %v1810_v32 }
  0xfa   : > { %v1845_v30 = vmul.f32 %v1837_v25, %v1824_v63 }
  0xfb   : > { %v1852_v24 = vmul.f32 %v1848_v58, %v1811_v18  ;;  %v1855_v8 = vsel %vm966_vm1, %v1850_v21, 0.0  ;;  %v1862_v41 = vsel %vm966_vm1, %v1851_v52, 0.0 }
  0xfc   : > { %v1849_v46 = vadd.f32 %v1845_v30, %v1820_v55  ;;  %v1856_v39 = vrot.slane %v1855_v8, 4  ;;  %v1863_v42 = vrot.slane %v1862_v41, 4 }
  0xfd   : > { %v1869_v47 = vsel %vm966_vm1, %v1852_v24, 0.0 }
  0xfe   : > { %v1853_v34 = vmul.f32 %v1849_v46, %v1812_v45  ;;  %v1857_v27 = vadd.f32 %v1856_v39, %v1855_v8  ;;  %v1864_v36 = vadd.f32 %v1863_v42, %v1862_v41  ;;  %v1870_v22 = vrot.slane %v1869_v47, 4 }
 0x100   : > { %v1858_v28 = vrot.slane %v1857_v27, 2  ;;  %v1865_v51 = vrot.slane %v1864_v36, 2  ;;  %v1871_v40 = vadd.f32 %v1870_v22, %v1869_v47  ;;  %v1876_v33 = vsel %vm966_vm1, %v1853_v34, 0.0 }
 0x101   : > { %v1877_v15 = vrot.slane %v1876_v33, 4  ;;  %vm1890_vm1 = vcmask 1043459  }
 0x102   : > { %v1859_v59 = vadd.f32 %v1858_v28, %v1857_v27  ;;  %v1866_v2 = vadd.f32 %v1865_v51, %v1864_v36  ;;  %v1872_v43 = vrot.slane %v1871_v40, 2 }
 0x103   : > { %v1878_v54 = vadd.f32 %v1877_v15, %v1876_v33 }
 0x104   : > { %v1860_v12 = vrot.slane %v1859_v59, 1  ;;  %v1867_v16 = vrot.slane %v1866_v2, 1  ;;  %v1873_v57 = vadd.f32 %v1872_v43, %v1871_v40 }
 0x105   : > { %v1879_v11 = vrot.slane %v1878_v54, 2 }
 0x106   : > { %v1861_v38 = vadd.f32 %v1860_v12, %v1859_v59  ;;  %v1868_v13 = vadd.f32 %v1867_v16, %v1866_v2  ;;  %v1874_v61 = vrot.slane %v1873_v57, 1 }
 0x107   : > { %v1880_v1 = vadd.f32 %v1879_v11, %v1878_v54 }
 0x108   : > { %v1875_v50 = vadd.f32 %v1874_v61, %v1873_v57  ;;  %v1887_v60 = vsel %vm1833_vm5, %v1868_v13, %v1861_v38 }
 0x109   : > { %v1881_v6 = vrot.slane %v1880_v1, 1 }
 0x10a   : > { %v1889_v20 = vsel %vm1888_vm2, %v1875_v50, %v1887_v60 }
 0x10b   : > { %v1882_v14 = vadd.f32 %v1881_v6, %v1880_v1 }
 0x10d   : > { %v1891_v62 = vsel %vm1890_vm1, %v1882_v14, %v1889_v20 }
 0x10e   : > { %v1893_v37 = vadd.f32 %v1891_v62, %v1854_v44 }
 0x110   : > { %1894 = vst [vmem:[%s807_s27] sm:$0xf] %v1893_v37 }
 0x111   : > { %2218 = shalt.err (!%p2215_p7)
}
 0x112   : > { %s2219_s22 = scalar_lea.hbm %s1907_s16, 64  ;;  %s2223_s18 = scalar_lea.hbm %s3263_s9, 128 }
 0x113   : > { %p2220_p10 = scmp.ne.s32.totalorder %s1907_s16, %s2219_s22  ;;  %p2224_p13 = scmp.lt.s32.totalorder %s1907_s16, %s3263_s9 }
 0x114   : > { %p2225_p0 = scmp.lt.s32.totalorder %s2223_s18, %s2219_s22 }
 0x115   : > { %p2221_p11 = pnand %p2220_p10, %p2364_p6 }
 0x116   : > { %p2226_p1 = por %p2225_p0, %p2224_p13 }
 0x117   : > { %p2222_p12 = pneg %p2221_p11 }
 0x119   : > { %p2227_p9 = pnand %p2226_p1, %p2222_p12 }
 0x11b   : > { %2230 = shalt.err (!%p2227_p9)
}
 0x11c   : > { %2131 = dma.vmem_to_hbm [thread:$0]  (%p2364_p6), %s1910_s28, 64, %s1907_s16, %s1896_s17  }
 0x11d PF: > { %s1921_s14 = sand.u32 1, %s2253_s30   ;;  %p3298_p2 = scmp.ge.s32.totalorder %s2265_s12, 2 }
 0x11e   : > { %s1922_s23 = scalar_lea.sflag [#allocation9], %s1921_s14 }
 0x11f   : > { %p2134_p3 = pnand %p3298_p2, %p2368_p8 }
 0x121   : > { %p2135_p4 = pneg %p2134_p3 }
 0x123   : > { %2248 = dma.done.wait (%p2135_p4), %s1922_s23, 64  }
 0x124   : > { %2250 = vsyncadd (%p2135_p4), %s1922_s23, 4294967232  ;;  %s3299_s24 = sld [smem:[#allocation11_spill]]  ;;  %p19_p9 = scmp.ge.s32.totalorder %s2346_s15, 4  }
 0x125   : > { %s3300_s30 = smov %s2257_s10  ;;  %s3301_s10 = smov %s2261_s11 }
 0x126   : > { %s3303_s12 = smov %s2346_s15  ;;  %21 = sbr.rel (!%p19_p9) target bundleno = 3 (0x3), region = 382 }
 0x12a   : > { %s3302_s11 = smov %s3299_s24 }
 0x12b   :  { %1927 = vsyncpa [#allocation9], 1 }
 0x12c   :  { %1929 = vsyncpa [#allocation9 + $0x1], 1 }

</bundles_post_ra>
